<compile_context>
chip_gen: v7x
topology: tpu7x:2x2x1
jax: 0.10.0
libtpu: 0.0.40
codegen_flags: <defaults>
</compile_context>

<pallas_src>
import jax
import jax.numpy as jnp
import numpy as np
from jax.experimental import pallas as pl
from jax.experimental.pallas import tpu as pltpu


_N_PARTIALS = 4      # fused weighted BCE, tp, pred&mask, label&mask
_KERNEL_TEMPS = 8    # ~live block-sized f32 temporaries in the kernel body


def _loss_kernel(x1_ref, x2_ref, z_ref, m_ref, cwm1_1_ref, cwm1_2_ref, out_ref):
    """One lane tile -> (1, 4, 128) lane-packed partial sums.

    Sublane rows of out[j]:
      0: sum w1*BCE(x1) + w2*BCE(x2)   (both BCE terms have weight 1.0 in the loss)
      1: tp  = sum pred*label*mask
      2: sum pred*mask
      3: sum label*mask                 (fp/fn derived in the wrapper)
    """
    x1 = x1_ref[...].astype(jnp.float32)      # (B, C, TL) logits (topview)
    x2 = x2_ref[...].astype(jnp.float32)      # (B, C, TL) logits (transform_topview)
    z = z_ref[...].astype(jnp.float32)        # (B, C, TL) labels in {0,1}
    m = m_ref[...].astype(jnp.float32)        # (B, 1, TL) valid mask in {0,1}
    cwm1_1 = cwm1_1_ref[...]                  # (1, C, 1)  class_weights_1 - 1
    cwm1_2 = cwm1_2_ref[...]                  # (1, C, 1)  class_weights_2 - 1

    # Hoist the mask->C broadcast once and reuse it (JAX does not CSE broadcasts).
    mb = jnp.broadcast_to(m, z.shape)         # (B, C, TL)
    zm = z * mb                               # reused for weights, tp and fn
    w1 = mb + cwm1_1 * zm                     # == ((cw - 1) * labels + 1) * mask
    w2 = mb + cwm1_2 * zm

    def bce(x):                               # numerically stable BCE-with-logits
        # TODO(synk): on v7x this softplus (exp + log per logit) is the likely
        # EUP-bound term; a bf16 EUP evaluation is possible if tolerance allows.
        return jnp.maximum(x, 0.0) - x * z + jnp.log1p(jnp.exp(-jnp.abs(x)))

    pred = (x1 > 0.0).astype(jnp.float32)     # sigmoid(x) > 0.5  <=>  x > 0

    def lane_partial(q):                      # (B, C, TL) -> (1, 128) lane partials
        r = jnp.sum(q, axis=1, keepdims=True)     # fold classes
        r = jnp.sum(r, axis=0)                    # fold batch            -> (1, TL)
        r = r.reshape(-1, 128)                    # fold TL lane-chunks
        return jnp.sum(r, axis=0, keepdims=True)  #                       -> (1, 128)

    rows = jnp.concatenate(
        [lane_partial(w1 * bce(x1) + w2 * bce(x2)),   # fused weighted BCE sum
         lane_partial(pred * zm),                     # true positives
         lane_partial(pred * mb),                     # predicted & valid
         lane_partial(zm)],                           # labelled & valid
        axis=0)                                       # (4, 128)
    out_ref[...] = rows[None]                         # lane-dense (1, 4, 128) store


def _choose_lane_tiling(L, max_tl):
    """Pick (TL, G): TL a multiple of 128, TL <= max_tl where possible, G*TL >= L.

    Prefers exact tilings (no padding) and an even G so the v7x megacore split over
    the 'parallel' grid axis stays balanced; falls back to padding the lane axis
    when L has awkward factors (tile choice independent of L's factorisation).
    """
    max_tl = max(128, (max_tl // 128) * 128)
    exact = []
    if L % 128 == 0:
        exact = [t for t in range(128, min(L, max_tl) + 1, 128) if L % t == 0]
    if exact:
        even = [t for t in exact if (L // t) % 2 == 0]
        tl = max(even) if even else max(exact)
        return tl, L // tl
    tl = min(max_tl, ((L + 127) // 128) * 128)
    g = -(-L // tl)
    return tl, g


def compute_losses_forward(outputs, gt_semantic_seg, features, retransform_features,
                           class_weights_1, class_weights_2, max_lane_tile=None):
    topview = outputs['topview']                        # (B, C, H, W), upstream dtype
    transform_topview = outputs['transform_topview']
    B, C, H, W = topview.shape
    L = H * W

    # gt: squeeze + threshold once; keep labels compact (int8) and the valid mask
    # per-batch (B, 1, L) — the kernel broadcasts it over the C classes for free.
    gtb = gt_semantic_seg[:, 0] > 0.5                   # (B, C+1, H, W) bool
    labels = gtb[:, :-1].reshape(B, C, L).astype(jnp.int8)
    mask = gtb[:, -1].reshape(B, 1, L).astype(jnp.int8)

    # Logits stay in the upstream dtype (cast to f32 in-kernel).  The kernel is
    # HBM-bound on v5e/v6e: if the *producer* can emit bf16 logits that nearly halves
    # traffic.  We deliberately do not cast here (an extra wrapper pass over HBM would
    # cost more than it saves).
    x1 = topview.reshape(B, C, L)
    x2 = transform_topview.reshape(B, C, L)

    cwm1_1 = (class_weights_1.astype(jnp.float32) - 1.0).reshape(1, C, 1)
    cwm1_2 = (class_weights_2.astype(jnp.float32) - 1.0).reshape(1, C, 1)

    # Generation-aware VMEM budget, including the in-kernel f32 temporaries (casts,
    # zm/w1/w2, bce terms, pred), not only the streamed double-buffered inputs.
    try:
        vmem_cap = int(pltpu.get_tpu_info().vmem_capacity_bytes)
    except Exception:
        vmem_cap = 64 * 1024 * 1024                      # assume smallest (v7x per-TC)
    vmem_limit = min(vmem_cap * 5 // 8, 64 * 1024 * 1024)  # ~40 MiB v7x, 64 MiB v5e/v6e
    budget = vmem_limit - 4 * 1024 * 1024                  # headroom (outputs, sems)

    stream_bpl = (B * C * (x1.dtype.itemsize + x2.dtype.itemsize + labels.dtype.itemsize)
                  + B * mask.dtype.itemsize)               # streamed bytes per lane
    temp_bpl = _KERNEL_TEMPS * B * C * 4                   # f32 temporaries per lane
    max_tl = max(128, budget // (2 * stream_bpl + temp_bpl))
    if max_lane_tile is not None:
        max_tl = min(max_tl, max_lane_tile)

    TL, G = _choose_lane_tiling(L, max_tl)
    Lp = TL * G
    if Lp != L:
        # zero-padded labels & mask make padded pixels contribute 0 to every sum
        pad = ((0, 0), (0, 0), (0, Lp - L))
        x1, x2 = jnp.pad(x1, pad), jnp.pad(x2, pad)
        labels, mask = jnp.pad(labels, pad), jnp.pad(mask, pad)

    grid_spec = pltpu.PrefetchScalarGridSpec(
        num_scalar_prefetch=0,
        grid=(G,),
        in_specs=[
            pl.BlockSpec((B, C, TL), lambda j: (0, 0, j)),   # topview logits
            pl.BlockSpec((B, C, TL), lambda j: (0, 0, j)),   # transform_topview logits
            pl.BlockSpec((B, C, TL), lambda j: (0, 0, j)),   # labels (int8)
            pl.BlockSpec((B, 1, TL), lambda j: (0, 0, j)),   # per-batch mask (int8)
            pl.BlockSpec((1, C, 1), lambda j: (0, 0, 0)),    # class_weights_1 - 1
            pl.BlockSpec((1, C, 1), lambda j: (0, 0, 0)),    # class_weights_2 - 1
        ],
        out_specs=pl.BlockSpec((1, _N_PARTIALS, 128), lambda j: (j, 0, 0)),
    )

    partials = pl.pallas_call(
        _loss_kernel,
        out_shape=jax.ShapeDtypeStruct((G, _N_PARTIALS, 128), jnp.float32),
        grid_spec=grid_spec,
        compiler_params=pltpu.CompilerParams(
            dimension_semantics=("parallel",),   # balanced tiles -> v7x megacore split
            vmem_limit_bytes=vmem_limit,
        ),
    )(x1, x2, labels, mask, cwm1_1, cwm1_2)

    totals = jnp.sum(partials, axis=(0, 2))               # tiny (G,4,128) -> (4,)
    s_bce, tp, s_pm, s_zm = (totals[i] for i in range(_N_PARTIALS))

    # L1 feature term: trivially fused by XLA; kept out of the hot kernel loop.
    transform_loss = jnp.mean(jnp.abs(features.astype(jnp.float32)
                                      - retransform_features.astype(jnp.float32)))

    n_seg = jnp.float32(B * C * L)
    seg_losses = s_bce / n_seg          # topview_loss + transform_topview_loss
    fp = s_pm - tp
    fn = s_zm - tp

    losses = {}
    losses['loss'] = seg_losses + 0.001 * transform_loss
    losses['acc_seg'] = tp / (tp + fn + fp)   # same 0/0 semantics as the reference
    return losses


def _reference(outputs, gt_semantic_seg, features, retransform_features, cw1, cw2):
    # pure-JAX reference mirroring the PyTorch module
    gt = gt_semantic_seg[:, 0] > 0.5
    labels = gt[:, :-1].astype(jnp.float32)
    mask = gt[:, -1].astype(jnp.float32)

    def bal_bce(x, w):
        weights = ((w.reshape(-1, 1, 1) - 1.0) * labels + 1.0) * mask[:, None]
        l = jnp.maximum(x, 0.0) - x * labels + jnp.log1p(jnp.exp(-jnp.abs(x)))
        return jnp.mean(weights * l)

    l1 = bal_bce(outputs['topview'].astype(jnp.float32), cw1)
    l2 = bal_bce(outputs['transform_topview'].astype(jnp.float32), cw2)
    l3 = jnp.mean(jnp.abs(features - retransform_features))
    pred = jax.nn.sigmoid(outputs['topview']) > 0.5
    lab = labels > 0.5
    mb = mask[:, None] > 0.5
    tp = jnp.sum(pred & lab & mb)
    fp = jnp.sum(pred & ~lab & mb)
    fn = jnp.sum(~pred & lab & mb)
    return {'loss': l1 + 0.001 * l3 + 1.0 * l2,
            'acc_seg': tp.astype(jnp.float32) / (tp + fn + fp).astype(jnp.float32)}


if __name__ == "__main__":
    key = jax.random.PRNGKey(0)
    B, C, H, W = 2, 14, 32, 32          # C fixed by class_weights = ones(14)
    k1, k2, k3, k4, k5 = jax.random.split(key, 5)

    outputs = {
        'topview': jax.random.normal(k1, (B, C, H, W), dtype=jnp.float32),
        'transform_topview': jax.random.normal(k2, (B, C, H, W), dtype=jnp.float32),
    }
    # gt has an extra leading singleton dim (squeezed in forward) and C+1 channels
    # (last channel is the valid-pixel mask).
    gt_semantic_seg = jax.random.bernoulli(k3, 0.5, (B, 1, C + 1, H, W)).astype(jnp.float32)
    features = jax.random.normal(k4, (B, 32, 8, 8), dtype=jnp.float32)
    retransform_features = jax.random.normal(k5, (B, 32, 8, 8), dtype=jnp.float32)

    # deterministic parameter init, matching nn.Module.__init__ (torch.ones(14))
    class_weights_1 = jnp.ones((C,), dtype=jnp.float32)
    class_weights_2 = jnp.ones((C,), dtype=jnp.float32)

    # cap the lane tile so the toy problem actually exercises a multi-step grid (G=4)
    losses = compute_losses_forward(outputs, gt_semantic_seg, features,
                                    retransform_features, class_weights_1,
                                    class_weights_2, max_lane_tile=256)
    jax.block_until_ready(losses)

    ref = _reference(outputs, gt_semantic_seg, features, retransform_features,
                     class_weights_1, class_weights_2)
    assert np.allclose(np.asarray(losses['loss']), np.asarray(ref['loss']),
                       rtol=5e-5, atol=1e-6)
    assert np.allclose(np.asarray(losses['acc_seg']), np.asarray(ref['acc_seg']),
                       rtol=5e-5, atol=1e-6)

    print("KERNEL_OK")
</pallas_src>

<mosaic_0001>
module attributes {stable_mosaic.version = 11 : i64} {
  func.func @_loss_kernel(%arg0: i32, %arg1: memref<2x14x256xf32, #tpu.memory_space<vmem>>, %arg2: memref<2x14x256xf32, #tpu.memory_space<vmem>>, %arg3: memref<2x14x256xi8, #tpu.memory_space<vmem>>, %arg4: memref<2x1x256xi8, #tpu.memory_space<vmem>>, %arg5: memref<1x14x1xf32, #tpu.memory_space<vmem>>, %arg6: memref<1x14x1xf32, #tpu.memory_space<vmem>>, %arg7: memref<1x4x128xf32, #tpu.memory_space<vmem>>) attributes {dimension_semantics = [#tpu.dimension_semantics<parallel>], iteration_bounds = array<i64: 4>, scalar_prefetch = 0 : i64, scratch_operands = 0 : i64, tpu.core_type = #tpu.core_type<tc>, window_params = [{transform_indices = @transform_0, window_bounds = array<i64: 2, 14, 256>}, {transform_indices = @transform_1, window_bounds = array<i64: 2, 14, 256>}, {transform_indices = @transform_2, window_bounds = array<i64: 2, 14, 256>}, {transform_indices = @transform_3, window_bounds = array<i64: 2, 1, 256>}, {pipeline_mode = #tpu.pipeline_mode<synchronous>, transform_indices = @transform_4, window_bounds = array<i64: 1, 14, 1>}, {pipeline_mode = #tpu.pipeline_mode<synchronous>, transform_indices = @transform_5, window_bounds = array<i64: 1, 14, 1>}, {transform_indices = @transform_6, window_bounds = array<i64: 1, 4, 128>}]} {
    %c0 = arith.constant 0 : index
    %c0_0 = arith.constant 0 : index
    %c0_1 = arith.constant 0 : index
    %0 = vector.load %arg1[%c0, %c0_0, %c0_1] : memref<2x14x256xf32, #tpu.memory_space<vmem>>, vector<2x14x256xf32>
    %c0_2 = arith.constant 0 : index
    %c0_3 = arith.constant 0 : index
    %c0_4 = arith.constant 0 : index
    %1 = vector.load %arg2[%c0_2, %c0_3, %c0_4] : memref<2x14x256xf32, #tpu.memory_space<vmem>>, vector<2x14x256xf32>
    %c0_5 = arith.constant 0 : index
    %c0_6 = arith.constant 0 : index
    %c0_7 = arith.constant 0 : index
    %2 = vector.load %arg3[%c0_5, %c0_6, %c0_7] : memref<2x14x256xi8, #tpu.memory_space<vmem>>, vector<2x14x256xi8>
    %3 = arith.sitofp %2 : vector<2x14x256xi8> to vector<2x14x256xf32>
    %c0_8 = arith.constant 0 : index
    %c0_9 = arith.constant 0 : index
    %c0_10 = arith.constant 0 : index
    %4 = vector.load %arg4[%c0_8, %c0_9, %c0_10] : memref<2x1x256xi8, #tpu.memory_space<vmem>>, vector<2x1x256xi8>
    %5 = arith.sitofp %4 : vector<2x1x256xi8> to vector<2x1x256xf32>
    %c0_11 = arith.constant 0 : index
    %c0_12 = arith.constant 0 : index
    %c0_13 = arith.constant 0 : index
    %6 = vector.load %arg5[%c0_11, %c0_12, %c0_13] : memref<1x14x1xf32, #tpu.memory_space<vmem>>, vector<1x14x1xf32>
    %c0_14 = arith.constant 0 : index
    %c0_15 = arith.constant 0 : index
    %c0_16 = arith.constant 0 : index
    %7 = vector.load %arg6[%c0_14, %c0_15, %c0_16] : memref<1x14x1xf32, #tpu.memory_space<vmem>>, vector<1x14x1xf32>
    %8 = vector.shape_cast %5 : vector<2x1x256xf32> to vector<2x1x256xf32>
    %9 = vector.broadcast %8 : vector<2x1x256xf32> to vector<2x14x256xf32>
    %10 = arith.mulf %3, %9 : vector<2x14x256xf32>
    %11 = vector.broadcast %6 : vector<1x14x1xf32> to vector<2x14x256xf32>
    %12 = arith.mulf %11, %10 : vector<2x14x256xf32>
    %13 = arith.addf %9, %12 : vector<2x14x256xf32>
    %14 = vector.broadcast %7 : vector<1x14x1xf32> to vector<2x14x256xf32>
    %15 = arith.mulf %14, %10 : vector<2x14x256xf32>
    %16 = arith.addf %9, %15 : vector<2x14x256xf32>
    %cst = arith.constant 0.000000e+00 : f32
    %17 = vector.broadcast %cst : f32 to vector<2x14x256xf32>
    %18 = arith.cmpf ogt, %0, %17 : vector<2x14x256xf32>
    %19 = arith.extui %18 : vector<2x14x256xi1> to vector<2x14x256xi32>
    %20 = arith.sitofp %19 : vector<2x14x256xi32> to vector<2x14x256xf32>
    %cst_17 = arith.constant 0.000000e+00 : f32
    %21 = vector.broadcast %cst_17 : f32 to vector<2x14x256xf32>
    %22 = arith.maximumf %0, %21 : vector<2x14x256xf32>
    %23 = arith.mulf %0, %3 : vector<2x14x256xf32>
    %24 = arith.subf %22, %23 : vector<2x14x256xf32>
    %25 = math.absf %0 : vector<2x14x256xf32>
    %cst_18 = arith.constant 0.000000e+00 : f32
    %26 = vector.broadcast %cst_18 : f32 to vector<2x14x256xf32>
    %27 = arith.subf %26, %25 : vector<2x14x256xf32>
    %28 = math.exp %27 : vector<2x14x256xf32>
    %29 = math.log1p %28 : vector<2x14x256xf32>
    %30 = arith.addf %24, %29 : vector<2x14x256xf32>
    %31 = arith.mulf %13, %30 : vector<2x14x256xf32>
    %cst_19 = arith.constant 0.000000e+00 : f32
    %32 = vector.broadcast %cst_19 : f32 to vector<2x14x256xf32>
    %33 = arith.maximumf %1, %32 : vector<2x14x256xf32>
    %34 = arith.mulf %1, %3 : vector<2x14x256xf32>
    %35 = arith.subf %33, %34 : vector<2x14x256xf32>
    %36 = math.absf %1 : vector<2x14x256xf32>
    %cst_20 = arith.constant 0.000000e+00 : f32
    %37 = vector.broadcast %cst_20 : f32 to vector<2x14x256xf32>
    %38 = arith.subf %37, %36 : vector<2x14x256xf32>
    %39 = math.exp %38 : vector<2x14x256xf32>
    %40 = math.log1p %39 : vector<2x14x256xf32>
    %41 = arith.addf %35, %40 : vector<2x14x256xf32>
    %42 = arith.mulf %16, %41 : vector<2x14x256xf32>
    %43 = arith.addf %31, %42 : vector<2x14x256xf32>
    %cst_21 = arith.constant dense<0.000000e+00> : vector<2x256xf32>
    %44 = vector.multi_reduction <add>, %43, %cst_21 [1] : vector<2x14x256xf32> to vector<2x256xf32>
    %45 = vector.shape_cast %44 : vector<2x256xf32> to vector<2x1x256xf32>
    %cst_22 = arith.constant dense<0.000000e+00> : vector<1x256xf32>
    %46 = vector.multi_reduction <add>, %45, %cst_22 [0] : vector<2x1x256xf32> to vector<1x256xf32>
    %47 = vector.shape_cast %46 : vector<1x256xf32> to vector<2x128xf32>
    %cst_23 = arith.constant dense<0.000000e+00> : vector<128xf32>
    %48 = vector.multi_reduction <add>, %47, %cst_23 [0] : vector<2x128xf32> to vector<128xf32>
    %49 = vector.shape_cast %48 : vector<128xf32> to vector<1x128xf32>
    %50 = arith.mulf %20, %10 : vector<2x14x256xf32>
    %cst_24 = arith.constant dense<0.000000e+00> : vector<2x256xf32>
    %51 = vector.multi_reduction <add>, %50, %cst_24 [1] : vector<2x14x256xf32> to vector<2x256xf32>
    %52 = vector.shape_cast %51 : vector<2x256xf32> to vector<2x1x256xf32>
    %cst_25 = arith.constant dense<0.000000e+00> : vector<1x256xf32>
    %53 = vector.multi_reduction <add>, %52, %cst_25 [0] : vector<2x1x256xf32> to vector<1x256xf32>
    %54 = vector.shape_cast %53 : vector<1x256xf32> to vector<2x128xf32>
    %cst_26 = arith.constant dense<0.000000e+00> : vector<128xf32>
    %55 = vector.multi_reduction <add>, %54, %cst_26 [0] : vector<2x128xf32> to vector<128xf32>
    %56 = vector.shape_cast %55 : vector<128xf32> to vector<1x128xf32>
    %57 = arith.mulf %20, %9 : vector<2x14x256xf32>
    %cst_27 = arith.constant dense<0.000000e+00> : vector<2x256xf32>
    %58 = vector.multi_reduction <add>, %57, %cst_27 [1] : vector<2x14x256xf32> to vector<2x256xf32>
    %59 = vector.shape_cast %58 : vector<2x256xf32> to vector<2x1x256xf32>
    %cst_28 = arith.constant dense<0.000000e+00> : vector<1x256xf32>
    %60 = vector.multi_reduction <add>, %59, %cst_28 [0] : vector<2x1x256xf32> to vector<1x256xf32>
    %61 = vector.shape_cast %60 : vector<1x256xf32> to vector<2x128xf32>
    %cst_29 = arith.constant dense<0.000000e+00> : vector<128xf32>
    %62 = vector.multi_reduction <add>, %61, %cst_29 [0] : vector<2x128xf32> to vector<128xf32>
    %63 = vector.shape_cast %62 : vector<128xf32> to vector<1x128xf32>
    %cst_30 = arith.constant dense<0.000000e+00> : vector<2x256xf32>
    %64 = vector.multi_reduction <add>, %10, %cst_30 [1] : vector<2x14x256xf32> to vector<2x256xf32>
    %65 = vector.shape_cast %64 : vector<2x256xf32> to vector<2x1x256xf32>
    %cst_31 = arith.constant dense<0.000000e+00> : vector<1x256xf32>
    %66 = vector.multi_reduction <add>, %65, %cst_31 [0] : vector<2x1x256xf32> to vector<1x256xf32>
    %67 = vector.shape_cast %66 : vector<1x256xf32> to vector<2x128xf32>
    %cst_32 = arith.constant dense<0.000000e+00> : vector<128xf32>
    %68 = vector.multi_reduction <add>, %67, %cst_32 [0] : vector<2x128xf32> to vector<128xf32>
    %69 = vector.shape_cast %68 : vector<128xf32> to vector<1x128xf32>
    %70 = tpu.concatenate %49, %56, %63, %69 in 0 : vector<1x128xf32>, vector<1x128xf32>, vector<1x128xf32>, vector<1x128xf32> -> vector<4x128xf32>
    %71 = vector.shape_cast %70 : vector<4x128xf32> to vector<1x4x128xf32>
    %c0_33 = arith.constant 0 : index
    %c0_34 = arith.constant 0 : index
    %c0_35 = arith.constant 0 : index
    %72 = vector.load %arg7[%c0_33, %c0_34, %c0_35] : memref<1x4x128xf32, #tpu.memory_space<vmem>>, vector<1x4x128xf32>
    tpu.vector_store %arg7[%c0_33, %c0_34, %c0_35], %71 {strides = array<i32>} : memref<1x4x128xf32, #tpu.memory_space<vmem>>, vector<1x4x128xf32>,
    return
  }
  func.func @transform_0(%arg0: i32) -> (i32, i32, i32) {
    %c0_i32 = arith.constant 0 : i32
    %c0_i32_0 = arith.constant 0 : i32
    %c0_i32_1 = arith.constant 0 : i32
    return %c0_i32, %c0_i32_0, %arg0 : i32, i32, i32
  }
  func.func @transform_1(%arg0: i32) -> (i32, i32, i32) {
    %c0_i32 = arith.constant 0 : i32
    %c0_i32_0 = arith.constant 0 : i32
    %c0_i32_1 = arith.constant 0 : i32
    return %c0_i32, %c0_i32_0, %arg0 : i32, i32, i32
  }
  func.func @transform_2(%arg0: i32) -> (i32, i32, i32) {
    %c0_i32 = arith.constant 0 : i32
    %c0_i32_0 = arith.constant 0 : i32
    %c0_i32_1 = arith.constant 0 : i32
    return %c0_i32, %c0_i32_0, %arg0 : i32, i32, i32
  }
  func.func @transform_3(%arg0: i32) -> (i32, i32, i32) {
    %c0_i32 = arith.constant 0 : i32
    %c0_i32_0 = arith.constant 0 : i32
    %c0_i32_1 = arith.constant 0 : i32
    return %c0_i32, %c0_i32_0, %arg0 : i32, i32, i32
  }
  func.func @transform_4(%arg0: i32) -> (i32, i32, i32) {
    %c0_i32 = arith.constant 0 : i32
    %c0_i32_0 = arith.constant 0 : i32
    %c0_i32_1 = arith.constant 0 : i32
    %c0_i32_2 = arith.constant 0 : i32
    return %c0_i32, %c0_i32_0, %c0_i32_1 : i32, i32, i32
  }
  func.func @transform_5(%arg0: i32) -> (i32, i32, i32) {
    %c0_i32 = arith.constant 0 : i32
    %c0_i32_0 = arith.constant 0 : i32
    %c0_i32_1 = arith.constant 0 : i32
    %c0_i32_2 = arith.constant 0 : i32
    return %c0_i32, %c0_i32_0, %c0_i32_1 : i32, i32, i32
  }
  func.func @transform_6(%arg0: i32) -> (i32, i32, i32) {
    %c0_i32 = arith.constant 0 : i32
    %c0_i32_0 = arith.constant 0 : i32
    %c0_i32_1 = arith.constant 0 : i32
    return %arg0, %c0_i32, %c0_i32_0 : i32, i32, i32
  }
}

</mosaic_0001>

<bundles_post_ra>
// kernel: tpu_custom_call.1
= control target key start
LH: loop header
LB: loop body
LE: loop exit
PB: predicated region body
PF: predicated region fallthrough
CT: control target
= control target key end

     0   :  { %11 = vsyncpa [#allocation7], 0  ;;  %s2414_s0 = inlined_call_operand.vmem [shape: f32[2,14,1024], index: 0, kind: input, shape index: {}]   ;;  %s2415_s1 = inlined_call_operand.vmem [shape: f32[2,14,1024], index: 1, kind: input, shape index: {}]   ;;  %s2416_s2 = inlined_call_operand.vmem [shape: s8[2,14,1024], index: 2, kind: input, shape index: {}]   ;;  %s2417_s3 = inlined_call_operand.vmem [shape: s8[2,1,1024], index: 3, kind: input, shape index: {}]   ;;  %s2418_s4 = inlined_call_operand.vmem [shape: f32[1,14,1], index: 4, kind: input, shape index: {}]   ;;  %s2419_s5 = inlined_call_operand.vmem [shape: f32[1,14,1], index: 5, kind: input, shape index: {}]   ;;  %s2420_s6 = inlined_call_operand.hbm [shape: f32[4,4,128], index: 6, kind: output, shape index: {}]  }
   0x1   :  { %13 = vsyncpa [#allocation7 + $0x1], 0  ;;  %s1565_s21 = smov 0   ;;  %s1567_s22 = smov 0  }
   0x2   :  { %s1569_s23 = smov 0   ;;  %s1571_s24 = smov 0  }
   0x3 LB: > { %s1301_s25 = sadd.s32 4294967295, %s1524_s24   ;;  %s1302_s26 = sadd.s32 4294967294, %s1524_s24   ;;  %s1524_s24 = sphi %s1571_s24, %s2560_s24   ;;  %s1520_s23 = sphi %s1569_s23, %s2559_s23   ;;  %s1516_s22 = sphi %s1567_s22, %s2558_s22   ;;  %s1512_s21 = sphi %s1565_s21, %s2557_s21  }
   0x4   : > { %s1588_s27 = sadd.s32 1, %s1524_s24   ;;  %s26_s28 = sadd.s32 1, %s1520_s23 }
   0x5   : > { %s23_s29 = ssub.s32 %s1524_s24, %s1588_s27  ;;  %p33_p0 = scmp.ne.s32.totalorder %s1520_s23, %s1516_s22 }
   0x6   : > { %p24_p1 = scmp.eq.s32.totalorder %s23_s29, 0  ;;  %p34_p2 = scmp.eq.s32.totalorder %s1524_s24, 0 }
   0x7   : > { %p183_p3 = scmp.eq.s32.totalorder %s1301_s25, 3  ;;  %p188_p4 = scmp.ne.s32.totalorder %s1516_s22, %s1512_s21 }
   0x8   : > { %s1601_s30 = scalar_select %p24_p1, %s1520_s23, %s26_s28  }
   0x9   : > { %p1603_p5 = por %p34_p2, %p33_p0  ;;  %p1607_p6 = por %p183_p3, %p33_p0 }
   0xa   : > { %p189_p7 = scmp.eq.s32.totalorder %s1302_s26, 3  ;;  %p1304_p9 = scmp.ge.s32.totalorder %s1524_s24, 4 }
   0xc   : > { %p1611_p8 = por %p189_p7, %p188_p4  ;;  %211 = sbr.rel (%p1304_p9) target bundleno = 49 (0x31), region = 24 }
  0x13   : > { %214 = sbr.rel (!%p1603_p5) target bundleno = 27 (0x1b), region = 28  ;;  %s216_s10 = sand.u32 (%p1603_p5), 1, %s1520_s23  }
  0x14   : > { %s1334_s11 = sshll.u32 (%p1603_p5), %s1524_s24, 4  ;;  %s1305_s12 = sshll.u32 (%p1603_p5), %s216_s10, 6 }
  0x15   : > { %s221_s15 = scalar_lea.vmem (%p1603_p5), %s2414_s0, %s1334_s11  ;;  %s218_s16 = scalar_lea.vmem (%p1603_p5), [#allocation2], %s1305_s12 }
  0x16   : > { %v234_v0 = vld [vmem:[%s221_s15] sm:$0xff] (%p1603_p5)  ;;  %v236_v1 = vld [vmem:[%s221_s15 + $0x8] sm:$0xff] (%p1603_p5) }
  0x17   : > { %v238_v2 = vld [vmem:[%s221_s15 + $0x40] sm:$0xff] (%p1603_p5)  ;;  %235 = vst [vmem:[%s218_s16] sm:$0xff] (%p1603_p5), %v234_v0  ;;  %237 = vst [vmem:[%s218_s16 + $0x8] sm:$0xff] (%p1603_p5), %v236_v1  ;;  %v240_v3 = vld [vmem:[%s221_s15 + $0x48] sm:$0xff] (%p1603_p5) }
  0x18   : > { %239 = vst [vmem:[%s218_s16 + $0x10] sm:$0xff] (%p1603_p5), %v238_v2  ;;  %v242_v4 = vld [vmem:[%s221_s15 + $0x80] sm:$0xff] (%p1603_p5)  ;;  %v244_v5 = vld [vmem:[%s221_s15 + $0x88] sm:$0xff] (%p1603_p5)  ;;  %241 = vst [vmem:[%s218_s16 + $0x18] sm:$0xff] (%p1603_p5), %v240_v3 }
  0x19   : > { %243 = vst [vmem:[%s218_s16 + $0x20] sm:$0xff] (%p1603_p5), %v242_v4  ;;  %245 = vst [vmem:[%s218_s16 + $0x28] sm:$0xff] (%p1603_p5), %v244_v5  ;;  %v246_v6 = vld [vmem:[%s221_s15 + $0xc0] sm:$0xff] (%p1603_p5)  ;;  %v248_v7 = vld [vmem:[%s221_s15 + $0xc8] sm:$0xff] (%p1603_p5) }
  0x1a   : > { %247 = vst [vmem:[%s218_s16 + $0x30] sm:$0xff] %v246_v6  ;;  %249 = vst [vmem:[%s218_s16 + $0x38] sm:$0xff] %v248_v7 }
  0x1b PF: > { %255 = sbr.rel (!%p1603_p5) target bundleno = 35 (0x23), region = 51  ;;  %s257_s17 = sand.u32 (%p1603_p5), 1, %s1520_s23  }
  0x1c   : > { %s1335_s18 = sshll.u32 (%p1603_p5), %s1524_s24, 4  ;;  %s1308_s19 = sshll.u32 (%p1603_p5), %s257_s17, 6 }
  0x1d   : > { %s262_s28 = scalar_lea.vmem (%p1603_p5), %s2415_s1, %s1335_s18  ;;  %s259_s29 = scalar_lea.vmem (%p1603_p5), [#allocation3], %s1308_s19 }
  0x1e   : > { %v275_v8 = vld [vmem:[%s262_s28] sm:$0xff] (%p1603_p5)  ;;  %v277_v9 = vld [vmem:[%s262_s28 + $0x8] sm:$0xff] (%p1603_p5) }
  0x1f   : > { %v279_v10 = vld [vmem:[%s262_s28 + $0x40] sm:$0xff] (%p1603_p5)  ;;  %276 = vst [vmem:[%s259_s29] sm:$0xff] (%p1603_p5), %v275_v8  ;;  %278 = vst [vmem:[%s259_s29 + $0x8] sm:$0xff] (%p1603_p5), %v277_v9  ;;  %v281_v11 = vld [vmem:[%s262_s28 + $0x48] sm:$0xff] (%p1603_p5) }
  0x20   : > { %280 = vst [vmem:[%s259_s29 + $0x10] sm:$0xff] (%p1603_p5), %v279_v10  ;;  %v283_v12 = vld [vmem:[%s262_s28 + $0x80] sm:$0xff] (%p1603_p5)  ;;  %v285_v13 = vld [vmem:[%s262_s28 + $0x88] sm:$0xff] (%p1603_p5)  ;;  %282 = vst [vmem:[%s259_s29 + $0x18] sm:$0xff] (%p1603_p5), %v281_v11 }
  0x21   : > { %284 = vst [vmem:[%s259_s29 + $0x20] sm:$0xff] (%p1603_p5), %v283_v12  ;;  %286 = vst [vmem:[%s259_s29 + $0x28] sm:$0xff] (%p1603_p5), %v285_v13  ;;  %v287_v14 = vld [vmem:[%s262_s28 + $0xc0] sm:$0xff] (%p1603_p5)  ;;  %v289_v15 = vld [vmem:[%s262_s28 + $0xc8] sm:$0xff] (%p1603_p5) }
  0x22   : > { %288 = vst [vmem:[%s259_s29 + $0x30] sm:$0xff] %v287_v14  ;;  %290 = vst [vmem:[%s259_s29 + $0x38] sm:$0xff] %v289_v15 }
  0x23 PF: > { %296 = sbr.rel (!%p1603_p5) target bundleno = 42 (0x2a), region = 74  ;;  %s298_s10 = sand.u32 (%p1603_p5), 1, %s1520_s23  }
  0x24   : > { %s1336_s11 = sshll.u32 (%p1603_p5), %s1524_s24, 2  ;;  %s1311_s12 = sshll.u32 (%p1603_p5), %s298_s10, 4 }
  0x25   : > { %s303_s15 = scalar_lea.vmem (%p1603_p5), %s2416_s2, %s1336_s11  ;;  %s300_s16 = scalar_lea.vmem (%p1603_p5), [#allocation4], %s1311_s12 }
  0x26   : > { %v319_v16 = vld [vmem:[%s303_s15] sm:$0xf] (%p1603_p5)  ;;  %v321_v17 = vld [vmem:[%s303_s15 + $0x10] sm:$0xf] (%p1603_p5) }
  0x27   : > { %320 = vst [vmem:[%s300_s16] sm:$0xf] (%p1603_p5), %v319_v16  ;;  %322 = vst [vmem:[%s300_s16 + $0x4] sm:$0xf] (%p1603_p5), %v321_v17  ;;  %v323_v18 = vld [vmem:[%s303_s15 + $0x20] sm:$0xf] (%p1603_p5) }
  0x28   : > { %v325_v19 = vld [vmem:[%s303_s15 + $0x30] sm:$0xf] (%p1603_p5)  ;;  %324 = vst [vmem:[%s300_s16 + $0x8] sm:$0xf] (%p1603_p5), %v323_v18 }
  0x29   : > { %326 = vst [vmem:[%s300_s16 + $0xc] sm:$0xf] (%p1603_p5), %v325_v19 }
  0x2a PF: > { %357 = sbr.rel (!%p1603_p5) target bundleno = 49 (0x31), region = 115  ;;  %s359_s17 = sand.u32 (%p1603_p5), 1, %s1520_s23  }
  0x2b   : > { %s1315_s18 = sshll.u32 (%p1603_p5), %s1524_s24, 1  ;;  %s1314_s19 = sshll.u32 (%p1603_p5), %s359_s17, 2 }
  0x2c   : > { %s363_s28 = scalar_lea.vmem (%p1603_p5), %s2417_s3, %s1315_s18  ;;  %s361_s29 = scalar_lea.vmem (%p1603_p5), [#allocation5], %s1314_s19 }
  0x2d   : > { %v379_v20 = vld [vmem:[%s363_s28] sm:$0x3] (%p1603_p5)  ;;  %v381_v21 = vld [vmem:[%s363_s28 + $0x8] sm:$0x3] (%p1603_p5) }
  0x2e   : > { %380 = vst [vmem:[%s361_s29] sm:$0x3] (%p1603_p5), %v379_v20  ;;  %382 = vst [vmem:[%s361_s29 + $0x2] sm:$0x3] (%p1603_p5), %v381_v21 }
  0x31 PF: > { %p1316_p10 = scmp.ge.s32.totalorder %s1524_s24, 1  ;;  %p400_p11 = scmp.lt.s32.totalorder %s1524_s24, 5 }
  0x33   : > { %p401_p12 = pnand %p1316_p10, %p400_p11 }
  0x35   : > { %404 = sbr.rel (%p401_p12) target bundleno = 256 (0x100), region = 149 }
  0x3c   : > { %v516_v22 = vld [vmem:[%s2418_s4 + $0x8] sm:$0x3f]  ;;  %v515_v23 = vld [vmem:[%s2418_s4] sm:$0xff]  ;;  %v1526_v24 = vmov 0   ;;  %s1659_s17 = sand.u32 1, %s1516_s22   ;;  %v521_v27 = vlaneseq  ;;  %v2421_v8 = vmov 0.0  }
  0x3d   : > { %1397 = vset.pattern.permute.xlu1 %v1526_v24  ;;  %1396 = vset.pattern.permute.xlu0 %v1526_v24  ;;  %v518_v25 = vld [vmem:[%s2419_s5 + $0x8] sm:$0x3f]  ;;  %v517_v26 = vld [vmem:[%s2419_s5] sm:$0xff]  ;;  %s1317_s18 = sshll.u32 %s1659_s17, 6  ;;  %s1319_s19 = sshll.u32 %s1659_s17, 4  ;;  %vm937_vm4 = vcmask 1045504  }
  0x3e   : > { %572 = vperm.xlu0 %1396, %v516_v22   ;;  %567 = vperm.xlu1 %1397, %v515_v23   ;;  %s1320_s20 = sshll.u32 %s1659_s17, 2  ;;  %s1664_s26 = scalar_lea.vmem [#allocation2], %s1317_s18  ;;  %v1675_v31 = vshrl.u32 %v521_v27, 7 }
  0x3f   : > { %v1667_v28 = vld [vmem:[%s1664_s26 + $0x10] sm:$0x3f]  ;;  %v1670_v29 = vld [vmem:[%s1664_s26 + $0x18] sm:$0x3f]  ;;  %s423_s28 = scalar_lea.vmem [#allocation4], %s1319_s19  ;;  %s430_s29 = scalar_lea.vmem [#allocation5], %s1320_s20 }
  0x40   : > { %v1673_v30 = vld [vmem:[%s1664_s26 + $0x30] sm:$0x3f]  ;;  %2454 = vst [vmem:[#allocation9_spill] sm:$0xff] %v1675_v31  ;;  %v1678_v32 = vld [vmem:[%s1664_s26 + $0x38] sm:$0x3f]  ;;  %v1691_v41 = vsub.s32 0, %v1675_v31 }
  0x41   : > { %v667_v33 = vand.u32 2147483647, %v1667_v28  ;;  %v1681_v34 = vld [vmem:[%s423_s28] sm:$0xff]   ;;  %v668_v36 = vand.u32 2147483647, %v1670_v29  ;;  %v1686_v37 = vld [vmem:[%s423_s28 + $0x8] sm:$0xff]  }
  0x42   : > { %598 = vperm.xlu0 %1396, %v518_v25   ;;  %593 = vperm.xlu1 %1397, %v517_v26   ;;  %v1351_v35 = vld [vmem:[%s430_s29] sm:$0xf]   ;;  %v671_v38 = vand.u32 2147483647, %v1673_v30  ;;  %v672_v40 = vand.u32 2147483647, %v1678_v32  ;;  %v1341_v43 = vunpack.c.2.s8 %v1681_v34  ;;  %v1342_v44 = vunpack.c.3.s8 %v1681_v34 }
  0x43   : > { %v675_v39 = vsub.f32 0.0, %v667_v33  ;;  %s1693_s7 = scalar_lea.vmem [#allocation3], %s1317_s18  ;;  %v1352_v45 = vunpack.c.0.s8 %v1351_v35  ;;  %v527_v46 = vsub.s32 4, %v1675_v31  ;;  %v1347_v47 = vunpack.c.2.s8 %v1686_v37  ;;  %s1331_s10 = sshll.u32 %s1301_s25, 6 }
  0x44   : > { %v1696_v42 = vld [vmem:[%s1693_s7 + $0x10] sm:$0x3f]  ;;  %v1353_v48 = vunpack.c.1.s8 %v1351_v35  ;;  %v676_v49 = vsub.f32 0.0, %v668_v36  ;;  %v1348_v50 = vunpack.c.3.s8 %v1686_v37  ;;  %v679_v51 = vsub.f32 0.0, %v671_v38  ;;  %v1708_v58 = vld [vmem:[%s1693_s7 + $0x18] sm:$0x3f]  ;;  %s2371_s15 = scalar_lea.hbm %s2420_s6, %s1331_s10 }
  0x45   : > { %v685_v52 = vmul.f32 1.442695, %v675_v39  ;;  %v1339_v53 = vunpack.c.0.s8 %v1681_v34  ;;  %v643_v54 = vmax.f32 %v1667_v28, 0.0  ;;  %v680_v55 = vsub.f32 0.0, %v672_v40  ;;  %v1715_v1 = vld [vmem:[%s1693_s7 + $0x30] sm:$0x3f] }
  0x46   : > { %v811_v56 = vand.u32 2147483647, %v1696_v42  ;;  %v1340_v57 = vunpack.c.1.s8 %v1681_v34  ;;  %v503_v59 = vcvt.s32.f32 %v1341_v43  ;;  %v504_v60 = vcvt.s32.f32 %v1342_v44  ;;  %v1729_v12 = vld [vmem:[%s1693_s7 + $0x38] sm:$0x3f]  ;;  %s468_s11 = scalar_lea.vmem [#allocation6], %s1320_s20  ;;  %s1170_s25 = scalar_lea.sflag [#allocation7], %s1659_s17 }
  0x47   : > { %v513_v61 = vcvt.s32.f32 %v1352_v45  ;;  %vm619_vm0 = vcmp.gt.f32.partialorder %v1667_v28, 0.0  ;;  %v1711_v62 = vcvt.s32.f32 %v1347_v47  ;;  %v514_v63 = vcvt.s32.f32 %v1353_v48  ;;  %s1183_s12 = sshll.u32 %s468_s11, 4  ;;  %s1529_s18 = smov [#allocation6]   ;;  %s2373_s12 = int_to_ptr.vmem [resolvable:$true] %s1183_s12 }
  0x48   : > { %vm620_vm1 = vcmp.gt.f32.partialorder %v1670_v29, 0.0  ;;  %v687_v0 = vmul.f32 1.442695, %v676_v49  ;;  %v508_v2 = vcvt.s32.f32 %v1348_v50  ;;  %vm623_vm2 = vcmp.gt.f32.partialorder %v1673_v30, 0.0  ;;  %s1462_s16 = scalar_lea.vmem %s2373_s12, 64  ;;  %s1466_s19 = sshll.u32 %s1529_s18, 4  ;;  %s1467_s19 = int_to_ptr.vmem [resolvable:$false] %s1466_s19 }
  0x49   : > { %1398 = vpow2.f32 %v685_v52  ;;  %v693_v3 = vmul.f32 1.442695, %v679_v51  ;;  %vm624_vm3 = vcmp.gt.f32.partialorder %v1678_v32, 0.0  ;;  %v695_v4 = vmul.f32 1.442695, %v680_v55  ;;  %p1463_p13 = scmp.ne.s32.totalorder %s2373_s12, %s1462_s16  ;;  %s1468_s20 = scalar_lea.vmem %s1467_s19, 128 }
  0x4a   : > { %v812_v5 = vand.u32 2147483647, %v1708_v58  ;;  %v819_v6 = vsub.f32 0.0, %v811_v56  ;;  %v524_v7 = vrot.slane %v513_v61, %v1691_v41  ;;  %v1724_v9 = vsel %vm619_vm0, 1.0, %v2421_v8  ;;  %p1469_p2 = scmp.lt.s32.totalorder %s2373_s12, %s1467_s19  ;;  %p1470_p3 = scmp.lt.s32.totalorder %s1468_s20, %s1462_s16 }
  0x4b   : > { %v644_v10 = vmax.f32 %v1670_v29, 0.0  ;;  %v647_v11 = vmax.f32 %v1673_v30, 0.0  ;;  %v528_v13 = vrot.slane %v513_v61, %v527_v46  ;;  %v532_v14 = vrot.slane %v514_v63, %v1691_v41  ;;  %p1464_p0 = pnand %p1463_p13, %p1607_p6 }
  0x4c   : > { %v536_v15 = vrot.slane %v514_v63, %v527_v46  ;;  %1400 = vpow2.f32 %v687_v0  ;;  %v651_v16 = vmul.f32 %v503_v59, %v1667_v28  ;;  %v652_v17 = vmul.f32 %v504_v60, %v1670_v29  ;;  %p1471_p4 = por %p1470_p3, %p1469_p2 }
  0x4d   : > { %1402 = vpow2.f32 %v693_v3  ;;  %v815_v18 = vand.u32 2147483647, %v1715_v1  ;;  %v655_v19 = vmul.f32 %v1711_v62, %v1673_v30  ;;  %v820_v20 = vsub.f32 0.0, %v812_v5  ;;  %p1465_p1 = pneg %p1464_p0 }
  0x4e   : > { %1404 = vpow2.f32 %v695_v4  ;;  %v829_v21 = vmul.f32 1.442695, %v819_v6  ;;  %v1738_v22 = vrot.slane %v524_v7, %v1691_v41  ;;  %v1325_v23 = vsel %vm620_vm1, 1.0, %v2421_v8 }
  0x4f   : > { %v1328_v24 = vsel %vm623_vm2, 1.0, %v2421_v8  ;;  %v816_v25 = vand.u32 2147483647, %v1729_v12  ;;  %v1748_v26 = vrot.slane %v528_v13, %v1691_v41  ;;  %v1751_v27 = vrot.slane %v532_v14, %v1691_v41  ;;  %p1472_p5 = pnand %p1471_p4, %p1465_p1 }
  0x50   : > { %2455 = vst [vmem:[#allocation10_spill] sm:$0xff] %v1738_v22  ;;  %v1329_v28 = vsel %vm624_vm3, 1.0, %v2421_v8  ;;  %v648_v29 = vmax.f32 %v1678_v32, 0.0  ;;  %v1758_v33 = vrot.slane %v536_v15, %v1691_v41  ;;  %v656_v30 = vmul.f32 %v508_v2, %v1678_v32 }
  0x51   : > { %2456 = vst [vmem:[#allocation11_spill] sm:$0xff] %v1748_v26  ;;  %2457 = vst [vmem:[#allocation12_spill] sm:$0xff] %v1751_v27  ;;  %v1761_v35 = vsub.f32 %v643_v54, %v651_v16  ;;  %v823_v36 = vsub.f32 0.0, %v815_v18  ;;  %v1763_v38 = vsub.f32 %v644_v10, %v652_v17  ;;  %v1765_v39 = vsub.f32 %v647_v11, %v655_v19 }
  0x52   : > { %2458 = vst [vmem:[#allocation13_spill] sm:$0xff] %v1758_v33  ;;  %1406 = vpow2.f32 %v829_v21  ;;  %v831_v40 = vmul.f32 1.442695, %v820_v20  ;;  %v1770_v44 = vmul.f32 %v1738_v22, %v503_v59  ;;  %v787_v45 = vmax.f32 %v1696_v42, 0.0 }
  0x53   : > { %v1767_v43 = vpop.eup %1398  ;;  %v795_v41 = vmul.f32 %v503_v59, %v1696_v42  ;;  %v824_v46 = vsub.f32 0.0, %v816_v25  ;;  %v1775_v32 = vmul.f32 %v1748_v26, %v504_v60  ;;  %v1779_v47 = vmul.f32 %v1751_v27, %v1711_v62 }
  0x54   : > { %2459 = vst [vmem:[#allocation14_spill] sm:$0xff] %v1770_v44  ;;  %v788_v48 = vmax.f32 %v1708_v58, 0.0  ;;  %v796_v49 = vmul.f32 %v504_v60, %v1708_v58  ;;  %v1784_v50 = vmul.f32 %v1758_v33, %v508_v2  ;;  %v1786_v51 = vsub.f32 %v648_v29, %v656_v30 }
  0x55   : > { %2460 = vst [vmem:[#allocation15_spill] sm:$0xff] %v1775_v32  ;;  %2461 = vst [vmem:[#allocation16_spill] sm:$0xff] %v1779_v47  ;;  %v791_v52 = vmax.f32 %v1715_v1, 0.0  ;;  %v837_v42 = vmul.f32 1.442695, %v823_v36  ;;  %v715_v55 = vadd.f32 1.0, %v1767_v43  ;;  %v799_v59 = vmul.f32 %v1711_v62, %v1715_v1 }
  0x56   : > { %2462 = vst [vmem:[#allocation17_spill] sm:$0xff] %v1784_v50  ;;  %v1789_v54 = vpop.eup %1400  ;;  %v792_v56 = vmax.f32 %v1729_v12, 0.0  ;;  %1408 = vpow2.f32 %v831_v40  ;;  %v800_v58 = vmul.f32 %v508_v2, %v1729_v12  ;;  %v1798_v60 = vsub.f32 %v787_v45, %v795_v41 }
  0x57   : > { %v1795_v61 = vpop.eup %1402  ;;  %v839_v63 = vmul.f32 1.442695, %v824_v46  ;;  %v993_v0 = vmul.f32 %v1724_v9, %v1770_v44  ;;  %v1804_v4 = vsub.f32 %v788_v48, %v796_v49  ;;  %v994_v5 = vmul.f32 %v1325_v23, %v1775_v32 }
  0x58   : > { %v1802_v3 = vpop.eup %1404  ;;  %v997_v6 = vmul.f32 %v1328_v24, %v1779_v47  ;;  %v998_v62 = vmul.f32 %v1329_v28, %v1784_v50  ;;  %v724_v1 = vadd.f32 1.0, %v1789_v54  ;;  %1410 = vpow2.f32 %v837_v42 }
  0x59   : > { %v1053_v2 = vmul.f32 %v1724_v9, %v1738_v22  ;;  %v1054_v7 = vmul.f32 %v1325_v23, %v1748_v26  ;;  %1412 = vlog2.f32 %v715_v55  ;;  %v751_v10 = vadd.f32 1.0, %v1795_v61 }
  0x5a   : > { %v1814_v11 = vsub.f32 %v791_v52, %v799_v59  ;;  %v1057_v12 = vmul.f32 %v1328_v24, %v1751_v27  ;;  %v760_v13 = vadd.f32 1.0, %v1802_v3  ;;  %v1818_v14 = vsub.f32 %v792_v56, %v800_v58 }
  0x5b   : > { %1414 = vpow2.f32 %v839_v63  ;;  %v1821_v15 = vsel %vm937_vm4, %v993_v0, 0.0  ;;  %v1826_v9 = vsel %vm937_vm4, %v994_v5, 0.0  ;;  %v1829_v17 = vsel %vm937_vm4, %v997_v6, 0.0 }
  0x5c   : > { %2463 = vst [vmem:[#allocation18_spill] sm:$0xff] %v1818_v14  ;;  %v1823_v16 = vpop.eup %1406  ;;  %v1832_v18 = vsel %vm937_vm4, %v998_v62, 0.0  ;;  %v1058_v19 = vmul.f32 %v1329_v28, %v1758_v33  ;;  %1416 = vlog2.f32 %v724_v1  ;;  %v1836_v20 = vsel %vm937_vm4, %v1053_v2, 0.0 }
  0x5d   : > { %v1839_v21 = vsel %vm937_vm4, %v1054_v7, 0.0  ;;  %v1843_v23 = vsel %vm937_vm4, %v1770_v44, 0.0  ;;  %v718_v24 = vmul.f32 -0.5, %v1767_v43  ;;  %1418 = vlog2.f32 %v751_v10 }
  0x5e   : > { %v1847_v25 = vsel %vm937_vm4, %v1057_v12, 0.0  ;;  %v1851_v28 = vsel %vm937_vm4, %v1775_v32, 0.0  ;;  %v727_v29 = vmul.f32 -0.5, %v1789_v54  ;;  %1420 = vlog2.f32 %v760_v13 }
  0x5f   : > { %v859_v30 = vadd.f32 1.0, %v1823_v16  ;;  %v1345_v36 = vunpack.c.0.s8 %v1686_v37  ;;  %v721_v45 = vand.u32 2147483647, %v1767_v43  ;;  %v754_v41 = vmul.f32 -0.5, %v1795_v61 }
  0x60   : > { %v1409_v40 = vpop.eup %1408  ;;  %v1859_v46 = vsel %vm937_vm4, %v1058_v19, 0.0  ;;  %v1863_v48 = vsel %vm937_vm4, %v1779_v47, 0.0  ;;  %v730_v49 = vand.u32 2147483647, %v1789_v54  ;;  %v763_v52 = vmul.f32 -0.5, %v1802_v3 }
  0x61   : > { %2464 = vst [vmem:[#allocation19_spill] sm:$0xff] %v1863_v48  ;;  %v1869_v42 = vsel %vm937_vm4, %v1784_v50, 0.0  ;;  %v1346_v55 = vunpack.c.1.s8 %v1686_v37  ;;  %v719_v56 = vadd.f32 1.0, %v718_v24  ;;  %v862_v59 = vmul.f32 -0.5, %v1823_v16 }
  0x62   : > { %2465 = vst [vmem:[#allocation20_spill] sm:$0xff] %v1869_v42  ;;  %v1875_v58 = vcvt.s32.f32 %v1339_v53  ;;  %v1879_v63 = vcvt.s32.f32 %v1340_v57  ;;  %v1881_v0 = vpop.eup %1410  ;;  %v728_v5 = vadd.f32 1.0, %v727_v29  ;;  %1422 = vlog2.f32 %v859_v30 }
  0x63   : > { %v868_v6 = vadd.f32 1.0, %v1409_v40  ;;  %v1883_v62 = vcvt.s32.f32 %v1345_v36  ;;  %v1413_v1 = vpop.eup %1412  ;;  %vm1885_vm5 = vcmp.lt.f32.partialorder %v721_v45, 0.0004427343  ;;  %v755_v2 = vadd.f32 1.0, %v754_v41 }
  0x64   : > { %v757_v53 = vand.u32 2147483647, %v1795_v61  ;;  %v871_v7 = vmul.f32 -0.5, %v1409_v40  ;;  %vm1892_vm6 = vcmp.lt.f32.partialorder %v730_v49, 0.0004427343  ;;  %v764_v57 = vadd.f32 1.0, %v763_v52 }
  0x65   : > { %v1890_v10 = vpop.eup %1414  ;;  %v766_v12 = vand.u32 2147483647, %v1802_v3  ;;  %v898_v13 = vmul.f32 -0.5, %v1881_v0  ;;  %v720_v19 = vmul.f32 %v1767_v43, %v719_v56  ;;  %v863_v24 = vadd.f32 1.0, %v862_v59 }
  0x66   : > { %v865_v29 = vand.u32 2147483647, %v1823_v16  ;;  %v895_v30 = vadd.f32 1.0, %v1881_v0  ;;  %v1417_v36 = vpop.eup %1416  ;;  %v717_v45 = vmul.f32 0.6931472, %v1413_v1  ;;  %v729_v41 = vmul.f32 %v1789_v54, %v728_v5 }
  0x67   : > { %1424 = vlog2.f32 %v868_v6  ;;  %v907_v49 = vmul.f32 -0.5, %v1890_v10  ;;  %v1419_v52 = vpop.eup %1418  ;;  %v756_v8 = vmul.f32 %v1795_v61, %v755_v2  ;;  %vm1904_vm7 = vcmp.lt.f32.partialorder %v757_v53, 0.0004427343  ;;  %v1922_v53 = vld [vmem:[%s1664_s26] sm:$0xff] }
  0x68   : > { %v872_v43 = vadd.f32 1.0, %v871_v7  ;;  %v904_v56 = vadd.f32 1.0, %v1890_v10  ;;  %v1421_v59 = vpop.eup %1420  ;;  %v765_v1 = vmul.f32 %v1802_v3, %v764_v57  ;;  %vm1910_vm8 = vcmp.lt.f32.partialorder %v766_v12, 0.0004427343 }
  0x69   : > { %v874_v5 = vand.u32 2147483647, %v1409_v40  ;;  %v899_v6 = vadd.f32 1.0, %v898_v13  ;;  %v726_v47 = vmul.f32 0.6931472, %v1417_v36  ;;  %v1915_v61 = vmul.f32 %v1823_v16, %v863_v24  ;;  %v1928_v13 = vld [vmem:[%s1664_s26 + $0x8] sm:$0xff] }
  0x6a   : > { %vm1917_vm9 = vcmp.lt.f32.partialorder %v865_v29, 0.0004427343  ;;  %1426 = vlog2.f32 %v895_v30  ;;  %v723_v3 = vsel %vm1885_vm5, %v720_v19, %v717_v45  ;;  %v753_v7 = vmul.f32 0.6931472, %v1419_v52 }
  0x6b   : > { %v901_v57 = vand.u32 2147483647, %v1881_v0  ;;  %v908_v12 = vadd.f32 1.0, %v907_v49  ;;  %v762_v36 = vmul.f32 0.6931472, %v1421_v59  ;;  %v1930_v16 = vmul.f32 %v1409_v40, %v872_v43  ;;  %v1953_v43 = vld [vmem:[%s1664_s26 + $0x20] sm:$0xff] }
  0x6c   : > { %1428 = vlog2.f32 %v904_v56  ;;  %v910_v24 = vand.u32 2147483647, %v1890_v10  ;;  %v1423_v29 = vpop.eup %1422  ;;  %vm1933_vm10 = vcmp.lt.f32.partialorder %v874_v5, 0.0004427343  ;;  %v1938_v37 = vmul.f32 %v1881_v0, %v899_v6  ;;  %v1985_v5 = vld [vmem:[%s1693_s7] sm:$0xff] }
  0x6d   : > { %v1940_v19 = vcvt.s32.f32 %v1346_v55  ;;  %v1944_v45 = vmul.f32 %v1738_v22, %v1875_v58  ;;  %v665_v40 = vand.u32 2147483647, %v1922_v53  ;;  %v732_v49 = vsel %vm1892_vm6, %v729_v41, %v726_v47  ;;  %v1966_v47 = vld [vmem:[%s1664_s26 + $0x28] sm:$0xff] }
  0x6e   : > { %v1950_v52 = vadd.f32 %v723_v3, %v1761_v35  ;;  %v1957_v0 = vmul.f32 %v1748_v26, %v1879_v63  ;;  %v666_v55 = vand.u32 2147483647, %v1928_v13  ;;  %v759_v56 = vsel %vm1904_vm7, %v756_v8, %v753_v7  ;;  %v1993_v3 = vld [vmem:[%s1693_s7 + $0x8] sm:$0xff] }
  0x6f   : > { %2478 = vst [vmem:[#allocation21_spill] sm:$0xff] %v1944_v45  ;;  %v1963_v59 = vmul.f32 %v1890_v10, %v908_v12  ;;  %v1970_v35 = vmul.f32 %v1751_v27, %v1883_v62  ;;  %vm617_vm11 = vcmp.gt.f32.partialorder %v1922_v53, 0.0  ;;  %v768_v34 = vsel %vm1910_vm8, %v765_v1, %v762_v36  ;;  %v2004_v36 = vld [vmem:[%s1693_s7 + $0x20] sm:$0xff] }
  0x70   : > { %2479 = vst [vmem:[#allocation22_spill] sm:$0xff] %v1950_v52  ;;  %2480 = vst [vmem:[#allocation23_spill] sm:$0xff] %v1957_v0  ;;  %v861_v41 = vmul.f32 0.6931472, %v1423_v29  ;;  %vm1975_vm12 = vcmp.lt.f32.partialorder %v901_v57, 0.0004427343  ;;  %v1982_v10 = vadd.f32 %v732_v49, %v1763_v38  ;;  %v1990_v6 = vadd.f32 %v759_v56, %v1765_v39 }
  0x71   : > { %2481 = vst [vmem:[#allocation24_spill] sm:$0xff] %v1970_v35  ;;  %vm618_vm13 = vcmp.gt.f32.partialorder %v1928_v13, 0.0  ;;  %vm621_vm14 = vcmp.gt.f32.partialorder %v1953_v43, 0.0  ;;  %v1425_v8 = vpop.eup %1424  ;;  %vm622_vm15 = vcmp.gt.f32.partialorder %v1966_v47, 0.0  ;;  %v669_v1 = vand.u32 2147483647, %v1953_v43 }
  0x72   : > { %2484 = vst [vmem:[#allocation25_spill] sm:$0xff] %v1982_v10  ;;  %v673_v54 = vsub.f32 0.0, %v665_v40  ;;  %2485 = vst [vmem:[#allocation26_spill] sm:$0xff] %v1990_v6  ;;  %v1997_v7 = vmul.f32 %v1758_v33, %v1940_v19  ;;  %v670_v38 = vand.u32 2147483647, %v1966_v47  ;;  %v674_v57 = vsub.f32 0.0, %v666_v55 }
  0x73   : > { %v2001_v12 = vadd.f32 %v768_v34, %v1786_v51  ;;  %v2488_v29 = vmov 0.0   ;;  %v867_v51 = vsel %vm1917_vm9, %v1915_v61, %v861_v41  ;;  %v870_v56 = vmul.f32 0.6931472, %v1425_v8  ;;  %v2025_v34 = vld [vmem:[%s1693_s7 + $0x28] sm:$0xff] }
  0x74   : > { %2486 = vst [vmem:[#allocation27_spill] sm:$0xff] %v1997_v7  ;;  %v2009_v40 = vsel %vm617_vm11, 1.0, %v2488_v29  ;;  %v2014_v39 = vsel %vm618_vm13, 1.0, %v2488_v29  ;;  %v2019_v49 = vsel %vm621_vm14, 1.0, %v2488_v29  ;;  %v1427_v55 = vpop.eup %1426  ;;  %v809_v6 = vand.u32 2147483647, %v1985_v5 }
  0x75   : > { %2487 = vst [vmem:[#allocation28_spill] sm:$0xff] %v2001_v12  ;;  %v2030_v12 = vsel %vm622_vm15, 1.0, %v2488_v29  ;;  %v641_v10 = vmax.f32 %v1922_v53, 0.0  ;;  %v677_v52 = vsub.f32 0.0, %v669_v1  ;;  %v681_v32 = vmul.f32 1.442695, %v673_v54 }
  0x76   : > { %v810_v44 = vand.u32 2147483647, %v1993_v3  ;;  %v1429_v31 = vpop.eup %1428  ;;  %v642_v2 = vmax.f32 %v1928_v13, 0.0  ;;  %v678_v61 = vsub.f32 0.0, %v670_v38  ;;  %v683_v41 = vmul.f32 1.442695, %v674_v57 }
  0x77   : > { %v813_v8 = vand.u32 2147483647, %v2004_v36  ;;  %v897_v14 = vmul.f32 0.6931472, %v1427_v55  ;;  %v2038_v42 = vadd.f32 %v867_v51, %v1798_v60  ;;  %v645_v29 = vmax.f32 %v1953_v43, 0.0 }
  0x78   : > { %v646_v48 = vmax.f32 %v1966_v47, 0.0  ;;  %v876_v1 = vsel %vm1933_vm10, %v1930_v16, %v870_v56  ;;  %vm2045_vm0 = vcmp.lt.f32.partialorder %v910_v24, 0.0004427343  ;;  %v649_v38 = vmul.f32 %v1875_v58, %v1922_v53 }
  0x79   : > { %2489 = vst [vmem:[#allocation29_spill] sm:$0xff] %v2038_v42  ;;  %v650_v57 = vmul.f32 %v1879_v63, %v1928_v13  ;;  %v817_v60 = vsub.f32 0.0, %v809_v6  ;;  %1430 = vpow2.f32 %v681_v32  ;;  %v689_v55 = vmul.f32 1.442695, %v677_v52 }
  0x7a   : > { %v814_v51 = vand.u32 2147483647, %v2025_v34  ;;  %v818_v42 = vsub.f32 0.0, %v810_v44  ;;  %v653_v30 = vmul.f32 %v1883_v62, %v1953_v43  ;;  %1432 = vpow2.f32 %v683_v41 }
  0x7b   : > { %v691_v16 = vmul.f32 1.442695, %v678_v61  ;;  %v821_v24 = vsub.f32 0.0, %v813_v8  ;;  %v903_v56 = vsel %vm1975_vm12, %v1938_v37, %v897_v14  ;;  %v2059_v53 = vmul.f32 0.6931472, %v1429_v31 }
  0x7c   : > { %v2062_v13 = vadd.f32 %v876_v1, %v1804_v4  ;;  %v991_v32 = vmul.f32 %v2009_v40, %v1944_v45  ;;  %v654_v44 = vmul.f32 %v1940_v19, %v1966_v47  ;;  %v825_v52 = vmul.f32 1.442695, %v817_v60 }
  0x7d   : > { %v992_v43 = vmul.f32 %v2014_v39, %v1957_v0  ;;  %v995_v6 = vmul.f32 %v2019_v49, %v1970_v35  ;;  %1434 = vpow2.f32 %v689_v55  ;;  %v822_v14 = vsub.f32 0.0, %v814_v51 }
  0x7e   : > { %2492 = vst [vmem:[#allocation30_spill] sm:$0xff] %v2062_v13  ;;  %v827_v31 = vmul.f32 1.442695, %v818_v42  ;;  %v996_v4 = vmul.f32 %v2030_v12, %v1997_v7  ;;  %v2075_v37 = vadd.f32 %v903_v56, %v1814_v11  ;;  %v2077_v50 = vsub.f32 %v641_v10, %v649_v38 }
  0x7f   : > { %1436 = vpow2.f32 %v691_v16  ;;  %v833_v47 = vmul.f32 1.442695, %v821_v24  ;;  %v2079_v61 = vsub.f32 %v642_v2, %v650_v57  ;;  %v785_v41 = vmax.f32 %v1985_v5, 0.0 }
  0x80   : > { %2493 = vst [vmem:[#allocation31_spill] sm:$0xff] %v2075_v37  ;;  %v786_v8 = vmax.f32 %v1993_v3, 0.0  ;;  %v1000_v1 = vadd.f32 %v1821_v15, %v991_v32  ;;  %v793_v42 = vmul.f32 %v1875_v58, %v1985_v5  ;;  %1438 = vpow2.f32 %v825_v52 }
  0x81   : > { %2494 = vst [vmem:[#allocation32_spill] sm:$0xff] %v2079_v61  ;;  %v1008_v60 = vadd.f32 %v1826_v9, %v992_v43  ;;  %v1016_v11 = vadd.f32 %v1829_v17, %v995_v6  ;;  %v794_v10 = vmul.f32 %v1879_v63, %v1993_v3  ;;  %1440 = vpow2.f32 %v827_v31 }
  0x82   : > { %v835_v2 = vmul.f32 1.442695, %v822_v14  ;;  %v1024_v38 = vadd.f32 %v1832_v18, %v996_v4  ;;  %v2091_v57 = vsub.f32 %v645_v29, %v653_v30  ;;  %v789_v55 = vmax.f32 %v2004_v36, 0.0 }
  0x83   : > { %v797_v15 = vmul.f32 %v1883_v62, %v2004_v36  ;;  %1442 = vpow2.f32 %v833_v47  ;;  %v1431_v58 = vpop.eup %1430  ;;  %v790_v17 = vmax.f32 %v2025_v34, 0.0  ;;  %v798_v63 = vmul.f32 %v1940_v19, %v2025_v34 }
  0x84   : > { %2495 = vst [vmem:[#allocation33_spill] sm:$0xff] %v2091_v57  ;;  %v1001_v18 = vrot.slane %v1000_v1, 4  ;;  %v1433_v5 = vpop.eup %1432  ;;  %v2103_v3 = vsub.f32 %v646_v48, %v654_v44  ;;  %v2105_v29 = vsub.f32 %v785_v41, %v793_v42  ;;  %v1009_v51 = vrot.slane %v1008_v60, 4 }
  0x85   : > { %v1017_v62 = vrot.slane %v1016_v11, 4  ;;  %v700_v36 = vmul.f32 -0.5, %v1431_v58  ;;  %v2107_v30 = vsub.f32 %v786_v8, %v794_v10  ;;  %1444 = vpow2.f32 %v835_v2 }
  0x86   : > { %2496 = vst [vmem:[#allocation34_spill] sm:$0xff] %v2103_v3  ;;  %2497 = vst [vmem:[#allocation35_spill] sm:$0xff] %v2105_v29  ;;  %v1025_v16 = vrot.slane %v1024_v38, 4  ;;  %v697_v24 = vadd.f32 1.0, %v1431_v58  ;;  %v709_v56 = vmul.f32 -0.5, %v1433_v5  ;;  %v2109_v32 = vsub.f32 %v789_v55, %v797_v15 }
  0x87   : > { %2498 = vst [vmem:[#allocation36_spill] sm:$0xff] %v2107_v30  ;;  %v1051_v19 = vmul.f32 %v2009_v40, %v1738_v22  ;;  %v1435_v34 = vpop.eup %1434  ;;  %v706_v52 = vadd.f32 1.0, %v1433_v5  ;;  %v2113_v48 = vsub.f32 %v790_v17, %v798_v63  ;;  %v2115_v44 = vadd.f32 %v1001_v18, %v1000_v1 }
  0x88   : > { %2499 = vst [vmem:[#allocation37_spill] sm:$0xff] %v2109_v32  ;;  %v1052_v43 = vmul.f32 %v2014_v39, %v1748_v26  ;;  %v736_v14 = vmul.f32 -0.5, %v1435_v34  ;;  %v2121_v31 = vadd.f32 %v1009_v51, %v1008_v60  ;;  %v2123_v4 = vadd.f32 %v1017_v62, %v1016_v11 }
  0x89   : > { %2500 = vst [vmem:[#allocation38_spill] sm:$0xff] %v2113_v48  ;;  %v2119_v6 = vpop.eup %1436  ;;  %v1055_v47 = vmul.f32 %v2019_v49, %v1751_v27  ;;  %v701_v40 = vadd.f32 1.0, %v700_v36  ;;  %v2128_v8 = vadd.f32 %v1025_v16, %v1024_v38  ;;  %v1056_v1 = vmul.f32 %v2030_v12, %v1758_v33 }
  0x8a   : > { %v745_v41 = vmul.f32 -0.5, %v2119_v6  ;;  %v2132_v42 = vpop.eup %1438  ;;  %1446 = vlog2.f32 %v697_v24  ;;  %v710_v39 = vadd.f32 1.0, %v709_v56  ;;  %v733_v10 = vadd.f32 1.0, %v1435_v34 }
  0x8b   : > { %v2135_v60 = vadd.f32 %v1836_v20, %v1051_v19  ;;  %v2137_v11 = vpop.eup %1440  ;;  %v703_v2 = vand.u32 2147483647, %v1431_v58  ;;  %1448 = vlog2.f32 %v706_v52  ;;  %v742_v49 = vadd.f32 1.0, %v2119_v6 }
  0x8c   : > { %v844_v38 = vmul.f32 -0.5, %v2132_v42  ;;  %v712_v15 = vand.u32 2147483647, %v1433_v5  ;;  %v737_v12 = vadd.f32 1.0, %v736_v14  ;;  %v853_v17 = vmul.f32 -0.5, %v2137_v11 }
  0x8d   : > { %v2141_v55 = vpop.eup %1442  ;;  %v1003_v63 = vrot.slane %v2115_v44, 2  ;;  %v2145_v18 = vmul.f32 %v1431_v58, %v701_v40  ;;  %v746_v20 = vadd.f32 1.0, %v745_v41  ;;  %v841_v51 = vadd.f32 1.0, %v2132_v42 }
  0x8e   : > { %v2149_v36 = vmul.f32 %v1433_v5, %v710_v39  ;;  %1450 = vlog2.f32 %v733_v10  ;;  %v739_v16 = vand.u32 2147483647, %v1435_v34  ;;  %v850_v24 = vadd.f32 1.0, %v2137_v11 }
  0x8f   : > { %v2152_v56 = vpop.eup %1444  ;;  %1452 = vlog2.f32 %v742_v49  ;;  %v748_v19 = vand.u32 2147483647, %v2119_v6  ;;  %v845_v52 = vadd.f32 1.0, %v844_v38  ;;  %v877_v58 = vadd.f32 1.0, %v2141_v55  ;;  %v2535_v14 = vld [vmem:[#allocation37_spill] sm:$0xff] }
  0x90   : > { %2501 = vst [vmem:[#allocation39_spill] sm:$0xff] %v2149_v36  ;;  %vm2156_vm1 = vcmp.lt.f32.partialorder %v703_v2, 0.0004427343  ;;  %v2160_v40 = vmul.f32 %v1435_v34, %v737_v12  ;;  %v854_v5 = vadd.f32 1.0, %v853_v17  ;;  %v880_v41 = vmul.f32 -0.5, %v2141_v55 }
  0x91   : > { %v1068_v39 = vadd.f32 %v1839_v21, %v1052_v43  ;;  %vm2164_vm2 = vcmp.lt.f32.partialorder %v712_v15, 0.0004427343  ;;  %v2504_v10 = vmov 0  ;;  %v2169_v49 = vmul.f32 %v2119_v6, %v746_v20 }
  0x92   : > { %v2505_v10 = vsel %vm2164_vm2, 4294967295, %v2504_v10  ;;  %1454 = vlog2.f32 %v841_v51  ;;  %v847_v2 = vand.u32 2147483647, %v2132_v42  ;;  %v1076_v38 = vadd.f32 %v1847_v25, %v1055_v47 }
  0x93   : > { %2506 = vst [vmem:[#allocation40_spill] sm:$0xff] %v2505_v10  ;;  %1456 = vlog2.f32 %v850_v24  ;;  %v856_v34 = vand.u32 2147483647, %v2137_v11  ;;  %v886_v12 = vadd.f32 1.0, %v2152_v56  ;;  %v1084_v17 = vadd.f32 %v1859_v46, %v1056_v1 }
  0x94   : > { %v2177_v21 = vmul.f32 %v2132_v42, %v845_v52  ;;  %1458 = vlog2.f32 %v877_v58  ;;  %v883_v43 = vand.u32 2147483647, %v2141_v55  ;;  %v1112_v6 = vadd.f32 %v1843_v23, %v1944_v45  ;;  %v1447_v15 = vpop.eup %1446  ;;  %v2509_v23 = vld [vmem:[#allocation19_spill] sm:$0xff] }
  0x95   : > { %vm2182_vm3 = vcmp.lt.f32.partialorder %v739_v16, 0.0004427343  ;;  %v2187_v25 = vmul.f32 %v2137_v11, %v854_v5  ;;  %v881_v47 = vadd.f32 1.0, %v880_v41  ;;  %v1061_v46 = vrot.slane %v2135_v60, 4  ;;  %v1449_v42 = vpop.eup %1448  ;;  %v2510_v11 = vld [vmem:[#allocation20_spill] sm:$0xff] }
  0x96   : > { %v1069_v1 = vrot.slane %v1068_v39, 4  ;;  %v1077_v51 = vrot.slane %v1076_v38, 4  ;;  %v1113_v24 = vrot.slane %v1112_v6, 4  ;;  %v1120_v52 = vadd.f32 %v1851_v28, %v1957_v0 }
  0x97   : > { %v1128_v58 = vadd.f32 %v2509_v23, %v1970_v35  ;;  %1460 = vlog2.f32 %v886_v12  ;;  %v889_v16 = vmul.f32 -0.5, %v2152_v56  ;;  %v1085_v9 = vrot.slane %v1084_v17, 4 }
  0x98   : > { %v1136_v5 = vadd.f32 %v2510_v11, %v1997_v7  ;;  %v2197_v41 = vmul.f32 0.6931472, %v1447_v15  ;;  %v892_v62 = vand.u32 2147483647, %v2152_v56  ;;  %v1121_v37 = vrot.slane %v1120_v52, 4  ;;  %v1451_v33 = vpop.eup %1450 }
  0x99   : > { %v1129_v13 = vrot.slane %v1128_v58, 4  ;;  %v2200_v27 = vmul.f32 0.6931472, %v1449_v42  ;;  %vm2202_vm5 = vcmp.lt.f32.partialorder %v748_v19, 0.0004427343  ;;  %v2207_v12 = vmul.f32 %v2141_v55, %v881_v47  ;;  %v1453_v15 = vpop.eup %1452 }
  0x9a   : > { %v2210_v23 = vadd.f32 %v1003_v63, %v2115_v44  ;;  %v1137_v11 = vrot.slane %v1136_v5, 4  ;;  %vm2212_vm6 = vcmp.lt.f32.partialorder %v847_v2, 0.0004427343  ;;  %v1062_v22 = vadd.f32 %v1061_v46, %v2135_v60 }
  0x9b   : > { %2511 = vst [vmem:[#allocation19_spill] sm:$0xff] %v2200_v27  ;;  %v1070_v42 = vadd.f32 %v1069_v1, %v1068_v39  ;;  %v1078_v7 = vadd.f32 %v1077_v51, %v1076_v38  ;;  %v1114_v19 = vadd.f32 %v1113_v24, %v1112_v6  ;;  %v1086_v35 = vadd.f32 %v1085_v9, %v1084_v17 }
  0x9c   : > { %v1122_v0 = vadd.f32 %v1121_v37, %v1120_v52  ;;  %v1130_v45 = vadd.f32 %v1129_v13, %v1128_v58  ;;  %v1138_v48 = vadd.f32 %v1137_v11, %v1136_v5  ;;  %v1455_v55 = vpop.eup %1454  ;;  %v2221_v63 = vmul.f32 0.6931472, %v1451_v33 }
  0x9d   : > { %v890_v2 = vadd.f32 1.0, %v889_v16  ;;  %v2516_v47 = vrot.slane %v2121_v31, 2  ;;  %v1457_v39 = vpop.eup %1456  ;;  %vm2230_vm7 = vcmp.lt.f32.partialorder %v856_v34, 0.0004427343  ;;  %vm2234_vm8 = vcmp.lt.f32.partialorder %v883_v43, 0.0004427343 }
  0x9e   : > { %vm2238_vm9 = vcmp.lt.f32.partialorder %v892_v62, 0.0004427343  ;;  %v1019_v38 = vrot.slane %v2123_v4, 2  ;;  %v1027_v17 = vrot.slane %v2128_v8, 2  ;;  %v1459_v6 = vpop.eup %1458  ;;  %v1063_v46 = vrot.slane %v1062_v22, 2 }
  0x9f   : > { %v1012_v60 = vadd.f32 %v2516_v47, %v2121_v31  ;;  %v1005_v31 = vrot.slane %v2210_v23, 1  ;;  %v1071_v34 = vrot.slane %v1070_v42, 2  ;;  %v1079_v1 = vrot.slane %v1078_v7, 2 }
  0xa0   : > { %v1115_v51 = vrot.slane %v1114_v19, 2  ;;  %v1087_v24 = vrot.slane %v1086_v35, 2  ;;  %v1123_v43 = vrot.slane %v1122_v0, 2  ;;  %v1131_v52 = vrot.slane %v1130_v45, 2 }
  0xa1   : > { %v1139_v58 = vrot.slane %v1138_v48, 2  ;;  %v741_v62 = vsel %vm2182_vm3, %v2160_v40, %v2221_v63  ;;  %v744_v16 = vmul.f32 0.6931472, %v1453_v15  ;;  %v891_v5 = vmul.f32 %v2152_v56, %v890_v2  ;;  %v1461_v47 = vpop.eup %1460 }
  0xa2   : > { %v1013_v11 = vrot.slane %v1012_v60, 1  ;;  %v843_v13 = vmul.f32 0.6931472, %v1455_v55  ;;  %v1020_v44 = vadd.f32 %v1019_v38, %v2123_v4  ;;  %v1028_v32 = vadd.f32 %v1027_v17, %v2128_v8 }
  0xa3   : > { %v1116_v30 = vadd.f32 %v1115_v51, %v1114_v19  ;;  %v1064_v29 = vadd.f32 %v1063_v46, %v1062_v22  ;;  %v1072_v3 = vadd.f32 %v1071_v34, %v1070_v42  ;;  %v1080_v57 = vadd.f32 %v1079_v1, %v1078_v7 }
  0xa4   : > { %v1124_v27 = vadd.f32 %v1123_v43, %v1122_v0  ;;  %v1132_v36 = vadd.f32 %v1131_v52, %v1130_v45  ;;  %v1140_v10 = vadd.f32 %v1139_v58, %v1138_v48  ;;  %v1088_v61 = vadd.f32 %v1087_v24, %v1086_v35  ;;  %v2523_v43 = vld [vmem:[#allocation18_spill] sm:$0xff] }
  0xa5   : > { %v750_v40 = vsel %vm2202_vm5, %v2169_v49, %v744_v16  ;;  %v852_v56 = vmul.f32 0.6931472, %v1457_v39  ;;  %v879_v20 = vmul.f32 0.6931472, %v1459_v6  ;;  %v888_v15 = vmul.f32 0.6931472, %v1461_v47 }
  0xa6   : > { %v849_v4 = vsel %vm2212_vm6, %v2177_v21, %v843_v13  ;;  %v1021_v8 = vrot.slane %v1020_v44, 1  ;;  %v1029_v19 = vrot.slane %v1028_v32, 1  ;;  %v1528_v22 = vmov 1935823168   ;;  %v2536_v52 = vld [vmem:[#allocation38_spill] sm:$0xff] }
  0xa7   : > { %v977_v42 = vunpack.c.l.s4 %v1528_v22  ;;  %v1065_v7 = vrot.slane %v1064_v29, 1  ;;  %v1073_v0 = vrot.slane %v1072_v3, 1  ;;  %v1081_v45 = vrot.slane %v1080_v57, 1 }
  0xa8   : > { %v1117_v48 = vrot.slane %v1116_v30, 1  ;;  %v1089_v35 = vrot.slane %v1088_v61, 1  ;;  %v1125_v55 = vrot.slane %v1124_v27, 1  ;;  %v1133_v63 = vrot.slane %v1132_v36, 1 }
  0xa9   : > { %v1141_v28 = vrot.slane %v1140_v10, 1  ;;  %v858_v49 = vsel %vm2230_vm7, %v2187_v25, %v852_v56  ;;  %v885_v26 = vsel %vm2234_vm8, %v2207_v12, %v879_v20  ;;  %v894_v21 = vsel %vm2238_vm9, %v891_v5, %v888_v15  ;;  %v2538_v20 = vld [vmem:[#allocation21_spill] sm:$0xff] }
  0xaa   : > { %v1006_v2 = vadd.f32 %v1005_v31, %v2210_v23  ;;  %v978_v39 = vunpack.c.0.s8 %v977_v42  ;;  %v1014_v13 = vadd.f32 %v1013_v11, %v1012_v60  ;;  %v1022_v38 = vadd.f32 %v1021_v8, %v1020_v44  ;;  %v2532_v23 = vld [vmem:[#allocation34_spill] sm:$0xff]  ;;  %v2534_v60 = vld [vmem:[#allocation36_spill] sm:$0xff]  ;;  %v2541_v42 = vld [vmem:[#allocation15_spill] sm:$0xff] }
  0xab   : > { %v1030_v17 = vadd.f32 %v1029_v19, %v1028_v32  ;;  %v1066_v6 = vadd.f32 %v1065_v7, %v1064_v29  ;;  %v1074_v46 = vadd.f32 %v1073_v0, %v1072_v3  ;;  %v1082_v34 = vadd.f32 %v1081_v45, %v1080_v57  ;;  %v2526_v57 = vld [vmem:[#allocation32_spill] sm:$0xff]  ;;  %v2540_v19 = vld [vmem:[#allocation14_spill] sm:$0xff] }
  0xac   : > { %v1118_v1 = vadd.f32 %v1117_v48, %v1116_v30  ;;  %v1090_v51 = vadd.f32 %v1089_v35, %v1088_v61  ;;  %v1126_v37 = vadd.f32 %v1125_v55, %v1124_v27  ;;  %v1134_v25 = vadd.f32 %v1133_v63, %v1132_v36  ;;  %v2528_v27 = vld [vmem:[#allocation39_spill] sm:$0xff]  ;;  %v2542_v0 = vld [vmem:[#allocation24_spill] sm:$0xff] }
  0xad   : > { %v1142_v24 = vadd.f32 %v1141_v28, %v1140_v10  ;;  %v2524_v12 = vsel %vm2045_vm0, %v1963_v59, %v2059_v53  ;;  %v2525_v29 = vsel %vm2156_vm1, %v2145_v18, %v2197_v41  ;;  %v2529_v61 = vld [vmem:[#allocation19_spill] sm:$0xff]  ;;  %v2531_v10 = vld [vmem:[#allocation33_spill] sm:$0xff]  ;;  %v774_v44 = vadd.f32 %v750_v40, %v2532_v23  ;;  %v2544_v55 = vld [vmem:[#allocation16_spill] sm:$0xff] }
  0xae   : > { %v920_v9 = vadd.f32 %v2524_v12, %v2523_v43  ;;  %v769_v3 = vadd.f32 %v2525_v29, %v2077_v50  ;;  %v2530_v32 = vsel %vm2164_vm2, %v2528_v27, %v2529_v61  ;;  %v773_v54 = vadd.f32 %v741_v62, %v2531_v10  ;;  %v2533_v59 = vld [vmem:[#allocation35_spill] sm:$0xff]  ;;  %v2537_v50 = vld [vmem:[#allocation9_spill] sm:$0xff] }
  0xaf   : > { %v770_v36 = vadd.f32 %v2530_v32, %v2526_v57  ;;  %v913_v53 = vadd.f32 %v849_v4, %v2533_v59  ;;  %v914_v33 = vadd.f32 %v858_v49, %v2534_v60  ;;  %v917_v31 = vadd.f32 %v885_v26, %v2535_v14  ;;  %v2539_v4 = vld [vmem:[#allocation23_spill] sm:$0xff]  ;;  %v2545_v28 = vld [vmem:[#allocation17_spill] sm:$0xff]  ;;  %v2546_v26 = vld [vmem:[#allocation10_spill] sm:$0xff] }
  0xb0   : > { %v918_v18 = vadd.f32 %v894_v21, %v2536_v52  ;;  %v2292_v41 = vsub.s32 %v978_v39, %v2537_v50  ;;  %v2294_v58 = vadd.f32 %v1022_v38, %v1006_v2  ;;  %v2296_v16 = vadd.f32 %v1030_v17, %v1014_v13  ;;  %v2543_v48 = vld [vmem:[#allocation27_spill] sm:$0xff] }
  0xb1   : > { %v2298_v62 = vadd.f32 %v1082_v34, %v1066_v6  ;;  %v2300_v47 = vadd.f32 %v1090_v51, %v1074_v46  ;;  %v2302_v40 = vadd.f32 %v1134_v25, %v1118_v1  ;;  %v2304_v56 = vadd.f32 %v1142_v24, %v1126_v37  ;;  %v2547_v2 = vld [vmem:[#allocation11_spill] sm:$0xff]  ;;  %v2548_v46 = vld [vmem:[#allocation12_spill] sm:$0xff]  ;;  %v2549_v1 = vld [vmem:[#allocation13_spill] sm:$0xff] }
  0xb2   : > { %vm983_vm10 = vcmask 1041408   ;;  %vm1166_vm11 = vcmask 1042432  }
  0xbd   : > { %v573_v5 = vpop.permute.xlu0 %572  ;;  %v568_v11 = vpop.permute.xlu1 %567 }
  0xbe   : > { %v575_v15 = vmul.f32 %v568_v11, %v2538_v20  ;;  %v576_v8 = vmul.f32 %v568_v11, %v2539_v4  ;;  %v577_v22 = vmul.f32 %v573_v5, %v2540_v19  ;;  %v578_v7 = vmul.f32 %v573_v5, %v2541_v42 }
  0xbf   : > { %v579_v45 = vmul.f32 %v568_v11, %v2542_v0  ;;  %v580_v35 = vmul.f32 %v568_v11, %v2543_v48  ;;  %v581_v63 = vmul.f32 %v573_v5, %v2544_v55  ;;  %v582_v49 = vmul.f32 %v573_v5, %v2545_v28  ;;  %v2550_v5 = vld [vmem:[#allocation29_spill] sm:$0xff] }
  0xc0   : > { %v583_v21 = vadd.f32 %v575_v15, %v2546_v26  ;;  %v584_v39 = vadd.f32 %v576_v8, %v2547_v2  ;;  %v585_v13 = vadd.f32 %v577_v22, %v2546_v26  ;;  %v586_v38 = vadd.f32 %v578_v7, %v2547_v2 }
  0xc1   : > { %v599_v17 = vpop.permute.xlu0 %598  ;;  %v594_v6 = vpop.permute.xlu1 %593  ;;  %v587_v34 = vadd.f32 %v579_v45, %v2548_v46  ;;  %v588_v51 = vadd.f32 %v580_v35, %v2549_v1  ;;  %v589_v37 = vadd.f32 %v581_v63, %v2548_v46  ;;  %v590_v25 = vadd.f32 %v582_v49, %v2549_v1  ;;  %v2553_v35 = vld [vmem:[#allocation22_spill] sm:$0xff]  ;;  %v2554_v63 = vld [vmem:[#allocation25_spill] sm:$0xff] }
  0xc2   : > { %v603_v24 = vmul.f32 %v599_v17, %v2540_v19  ;;  %v604_v43 = vmul.f32 %v599_v17, %v2541_v42  ;;  %v607_v12 = vmul.f32 %v599_v17, %v2544_v55  ;;  %v608_v29 = vmul.f32 %v599_v17, %v2545_v28 }
  0xc3   : > { %v601_v57 = vmul.f32 %v594_v6, %v2538_v20  ;;  %v602_v30 = vmul.f32 %v594_v6, %v2539_v4  ;;  %v605_v27 = vmul.f32 %v594_v6, %v2542_v0  ;;  %v606_v61 = vmul.f32 %v594_v6, %v2543_v48  ;;  %v2551_v20 = vld [vmem:[#allocation30_spill] sm:$0xff]  ;;  %v2552_v4 = vld [vmem:[#allocation31_spill] sm:$0xff]  ;;  %v2556_v6 = vld [vmem:[#allocation28_spill] sm:$0xff] }
  0xc4   : > { %v611_v32 = vadd.f32 %v603_v24, %v2546_v26  ;;  %v612_v10 = vadd.f32 %v604_v43, %v2547_v2  ;;  %v615_v23 = vadd.f32 %v607_v12, %v2548_v46  ;;  %v616_v59 = vadd.f32 %v608_v29, %v2549_v1 }
  0xc5   : > { %v609_v60 = vadd.f32 %v601_v57, %v2546_v26  ;;  %v610_v14 = vadd.f32 %v602_v30, %v2547_v2  ;;  %v613_v52 = vadd.f32 %v605_v27, %v2548_v46  ;;  %v614_v50 = vadd.f32 %v606_v61, %v2549_v1  ;;  %v2555_v2 = vld [vmem:[#allocation26_spill] sm:$0xff] }
  0xc6   : > { %v923_v11 = vmul.f32 %v2550_v5, %v611_v32  ;;  %v924_v15 = vmul.f32 %v2551_v20, %v612_v10  ;;  %v927_v8 = vmul.f32 %v2552_v4, %v615_v23  ;;  %v928_v19 = vmul.f32 %v920_v9, %v616_v59 }
  0xc7   : > { %v921_v22 = vmul.f32 %v913_v53, %v609_v60  ;;  %v922_v42 = vmul.f32 %v914_v33, %v610_v14  ;;  %v925_v7 = vmul.f32 %v917_v31, %v613_v52  ;;  %v926_v0 = vmul.f32 %v918_v18, %v614_v50 }
  0xc8   : > { %v777_v45 = vmul.f32 %v769_v3, %v583_v21  ;;  %v778_v48 = vmul.f32 %v770_v36, %v584_v39  ;;  %v779_v55 = vmul.f32 %v2553_v35, %v585_v13  ;;  %v780_v28 = vmul.f32 %v2554_v63, %v586_v38 }
  0xc9   : > { %v781_v49 = vmul.f32 %v773_v54, %v587_v34  ;;  %v782_v26 = vmul.f32 %v774_v44, %v588_v51  ;;  %v783_v17 = vmul.f32 %v2555_v2, %v589_v37  ;;  %v784_v46 = vmul.f32 %v2556_v6, %v590_v25 }
  0xca   : > { %v929_v1 = vadd.f32 %v921_v22, %v777_v45  ;;  %v930_v24 = vadd.f32 %v922_v42, %v778_v48  ;;  %v931_v43 = vadd.f32 %v923_v11, %v779_v55  ;;  %v932_v9 = vadd.f32 %v924_v15, %v780_v28 }
  0xcb   : > { %v933_v53 = vadd.f32 %v925_v7, %v781_v49  ;;  %v934_v33 = vadd.f32 %v926_v0, %v782_v26  ;;  %v935_v31 = vadd.f32 %v927_v8, %v783_v17  ;;  %v936_v18 = vadd.f32 %v928_v19, %v784_v46 }
  0xcc   : > { %v938_v3 = vsel %vm937_vm4, %v931_v43, 0.0  ;;  %v946_v36 = vsel %vm937_vm4, %v932_v9, 0.0  ;;  %v1035_v54 = vcombine.low %v2294_v58, %v2296_v16  ;;  %v1095_v44 = vcombine.low %v2298_v62, %v2300_v47 }
  0xcd   : > { %v939_v21 = vadd.f32 %v938_v3, %v929_v1  ;;  %v947_v39 = vadd.f32 %v946_v36, %v930_v24  ;;  %v954_v13 = vsel %vm937_vm4, %v935_v31, 0.0  ;;  %v962_v38 = vsel %vm937_vm4, %v936_v18, 0.0 }
  0xce   : > { %v955_v34 = vadd.f32 %v954_v13, %v933_v53  ;;  %v963_v51 = vadd.f32 %v962_v38, %v934_v33  ;;  %v1147_v37 = vcombine.low %v2302_v40, %v2304_v56  ;;  %v1043_v58 = vrot.slane %v1035_v54, %v2292_v41 }
  0xcf   : > { %v940_v25 = vrot.slane %v939_v21, 4  ;;  %v948_v12 = vrot.slane %v947_v39, 4  ;;  %v1103_v62 = vrot.slane %v1095_v44, %v2292_v41  ;;  %vm1163_vm4 = vcmask 1040384  }
  0xd0   : > { %v956_v29 = vrot.slane %v955_v34, 4  ;;  %v964_v57 = vrot.slane %v963_v51, 4  ;;  %v1155_v61 = vrot.slane %v1147_v37, %v2292_v41  ;;  %v1044_v40 = vsel %vm983_vm10, %v1043_v58, 0.0 }
  0xd1   : > { %v941_v16 = vadd.f32 %v940_v25, %v939_v21  ;;  %v949_v30 = vadd.f32 %v948_v12, %v947_v39  ;;  %v1104_v14 = vsel %vm983_vm10, %v1103_v62, 0.0  ;;  %v1045_v15 = vrot.slane %v1044_v40, 4 }
  0xd2   : > { %v957_v47 = vadd.f32 %v956_v29, %v955_v34  ;;  %v965_v27 = vadd.f32 %v964_v57, %v963_v51  ;;  %v1156_v5 = vsel %vm983_vm10, %v1155_v61, 0.0  ;;  %v1105_v19 = vrot.slane %v1104_v14, 4 }
  0xd3   : > { %v942_v32 = vrot.slane %v941_v16, 2  ;;  %v950_v10 = vrot.slane %v949_v30, 2  ;;  %v1157_v7 = vrot.slane %v1156_v5, 4  ;;  %v1046_v48 = vadd.f32 %v1045_v15, %v1044_v40 }
  0xd4   : > { %v958_v23 = vrot.slane %v957_v47, 2  ;;  %v966_v59 = vrot.slane %v965_v27, 2  ;;  %v1106_v63 = vadd.f32 %v1105_v19, %v1104_v14 }
  0xd5   : > { %v943_v56 = vadd.f32 %v942_v32, %v941_v16  ;;  %v951_v60 = vadd.f32 %v950_v10, %v949_v30  ;;  %v1158_v28 = vadd.f32 %v1157_v7, %v1156_v5  ;;  %v1047_v26 = vrot.slane %v1046_v48, 2 }
  0xd6   : > { %v959_v52 = vadd.f32 %v958_v23, %v957_v47  ;;  %v967_v50 = vadd.f32 %v966_v59, %v965_v27  ;;  %v1107_v17 = vrot.slane %v1106_v63, 2 }
  0xd7   : > { %v944_v11 = vrot.slane %v943_v56, 1  ;;  %v952_v20 = vrot.slane %v951_v60, 1  ;;  %v1159_v6 = vrot.slane %v1158_v28, 2  ;;  %v1048_v24 = vadd.f32 %v1047_v26, %v1046_v48 }
  0xd8   : > { %v960_v4 = vrot.slane %v959_v52, 1  ;;  %v968_v8 = vrot.slane %v967_v50, 1  ;;  %v1108_v43 = vadd.f32 %v1107_v17, %v1106_v63 }
  0xd9   : > { %v945_v22 = vadd.f32 %v944_v11, %v943_v56  ;;  %v953_v42 = vadd.f32 %v952_v20, %v951_v60  ;;  %v1160_v53 = vadd.f32 %v1159_v6, %v1158_v28  ;;  %v1049_v31 = vrot.slane %v1048_v24, 1 }
  0xda   : > { %v961_v0 = vadd.f32 %v960_v4, %v959_v52  ;;  %v969_v45 = vadd.f32 %v968_v8, %v967_v50  ;;  %v1109_v18 = vrot.slane %v1108_v43, 1 }
  0xdb   : > { %v1161_v36 = vrot.slane %v1160_v53, 1  ;;  %v1050_v44 = vadd.f32 %v1049_v31, %v1048_v24 }
  0xdc   : > { %v970_v35 = vadd.f32 %v961_v0, %v945_v22  ;;  %v971_v55 = vadd.f32 %v969_v45, %v953_v42 }
  0xdd   : > { %v1162_v39 = vadd.f32 %v1161_v36, %v1160_v53 }
  0xde   : > { %v974_v49 = vcombine.low %v970_v35, %v971_v55 }
  0xe0   : > { %v982_v2 = vrot.slane %v974_v49, %v2292_v41  ;;  %v1110_v41 = vadd.f32 %v1109_v18, %v1108_v43 }
  0xe2   : > { %v984_v46 = vsel %vm983_vm10, %v982_v2, 0.0 }
  0xe3   : > { %v985_v1 = vrot.slane %v984_v46, 4 }
  0xe5   : > { %v986_v9 = vadd.f32 %v985_v1, %v984_v46 }
  0xe7   : > { %v987_v33 = vrot.slane %v986_v9, 2 }
  0xe9   : > { %v988_v3 = vadd.f32 %v987_v33, %v986_v9 }
  0xeb   : > { %v989_v54 = vrot.slane %v988_v3, 1 }
  0xed   : > { %v990_v21 = vadd.f32 %v989_v54, %v988_v3 }
  0xef   : > { %v1164_v13 = vsel %vm1163_vm4, %v990_v21, %v1050_v44 }
  0xf0   : > { %v1165_v38 = vsel %vm983_vm10, %v1164_v13, %v1110_v41 }
  0xf1   : > { %v1167_v34 = vsel %vm1166_vm11, %v1165_v38, %v1162_v39 }
  0xf2   : > { %1168 = vst [vmem:[%s468_s11] sm:$0xf] %v1167_v34 }
  0xf3   : > { %1475 = shalt.err (!%p1472_p5)
}
  0xf4   : > { %s1476_s17 = scalar_lea.hbm %s2371_s15, 64  ;;  %s1480_s29 = scalar_lea.hbm %s2420_s6, 256 }
  0xf5   : > { %p1477_p7 = scmp.ne.s32.totalorder %s2371_s15, %s1476_s17  ;;  %p1481_p11 = scmp.lt.u32.totalorder %s2371_s15, %s2420_s6 }
  0xf6   : > { %p1482_p12 = scmp.lt.u32.totalorder %s1480_s29, %s1476_s17  ;;  %p1484_p0 = scmp.lt.u32.totalorder %s1476_s17, %s2371_s15 }
  0xf7   : > { %p1478_p9 = pnand %p1477_p7, %p1607_p6 }
  0xf8   : > { %p1483_p13 = por %p1482_p12, %p1481_p11 }
  0xf9   : > { %p1479_p10 = pneg %p1478_p9 }
  0xfa   : > { %p1485_p1 = por %p1484_p0, %p1483_p13 }
  0xfc   : > { %p1486_p2 = pnand %p1485_p1, %p1479_p10 }
  0xfe   : > { %1489 = shalt.err (!%p1486_p2)
}
  0xff   : > { %1354 = dma.vmem_to_hbm [thread:$0]  (%p1607_p6), %s2373_s12, 64, %s2371_s15, %s1170_s25  }
 0x100 PF: > { %p1360_p3 = scmp.ge.s32.totalorder %s1524_s24, 2  ;;  %s1195_s11 = sand.u32 1, %s1512_s21  }
 0x101   : > { %s1196_s13 = scalar_lea.sflag [#allocation7], %s1195_s11 }
 0x102   : > { %p1357_p4 = pnand %p1360_p3, %p1611_p8 }
 0x104   : > { %1507 = dma.done.wait (!%p1357_p4), %s1196_s13, 64  }
 0x105   : > { %1509 = vsyncadd (!%p1357_p4), %s1196_s13, 4294967232  ;;  %p16_p5 = scmp.ge.s32.totalorder %s1588_s27, 6   ;;  %s2557_s21 = smov %s1516_s22 }
 0x106   : > { %s2558_s22 = smov %s1520_s23  ;;  %s2559_s23 = smov %s1601_s30 }
 0x107   : > { %s2560_s24 = smov %s1588_s27  ;;  %18 = sbr.rel (!%p16_p5) target bundleno = 3 (0x3), region = 229 }
 0x10e   :  { %1201 = vsyncpa [#allocation7], 1 }
 0x10f   :  { %1203 = vsyncpa [#allocation7 + $0x1], 1 }

</bundles_post_ra>
